<compile_context>
chip_gen: v7x
topology: tpu7x:2x2x1
jax: 0.10.0
libtpu: 0.0.40
codegen_flags: <defaults>
</compile_context>

<pallas_src>
import jax
import jax.numpy as jnp
import numpy as np
from jax.experimental import pallas as pl
from jax.experimental.pallas import tpu as pltpu


def _vmem_limit(estimate_bytes, headroom=4 << 20, cap=60 << 20):
    """Scoped-VMEM budget: estimate + headroom, capped below v7x's 64 MiB."""
    return int(min(max(estimate_bytes + headroom, 16 << 20), cap))


# -----------------------------------------------------------------------------
# Kernel A: embedding gather + attention + attn_combine + ReLU + 1-step GRU
# -----------------------------------------------------------------------------
def _prologue_kernel(ids_ref,                      # SMEM (B,) int32  [scalar prefetch]
                     emb_hbm,                      # HBM  (V, H)      [pl.ANY]
                     h0_ref,                       # VMEM (B, H)
                     enc_ref,                      # VMEM (B, L, H)
                     wattn_ref, battn_ref,         # VMEM (2H, L), (1, L)
                     wcomb_ref, bcomb_ref,         # VMEM (2H, H), (1, H)
                     wih_ref, whh_ref,             # VMEM (H, 3H), (H, 3H)
                     bih_ref, bhh_ref,             # VMEM (1, 3H), (1, 3H)
                     hnew_ref, attnw_ref,          # outputs (B, H), (B, L)
                     emb_buf, sem):                # scratch VMEM (B, H), DMA sems (B,)
    B, H = h0_ref.shape
    L = attnw_ref.shape[1]

    # Real gather: DMA only the B required embedding rows from HBM.  Start all
    # copies first, then overlap them with the hidden-only matmuls below.
    copies = []
    for b in range(B):
        cp = pltpu.make_async_copy(
            emb_hbm.at[pl.ds(ids_ref[b], 1), :],
            emb_buf.at[pl.ds(b, 1), :],
            sem.at[b])
        cp.start()
        copies.append(cp)

    h = h0_ref[...]                                                     # (B, H)
    # h-only work overlapped with the gather DMAs (no dependence on `embedded`)
    attn_logits_h = jnp.dot(h, wattn_ref[H:2 * H, :],
                            preferred_element_type=jnp.float32)         # (B, L)
    gh = jnp.dot(h, whh_ref[...], preferred_element_type=jnp.float32) + bhh_ref[...]

    for cp in copies:
        cp.wait()
    embedded = emb_buf[...]                                             # (B, H)
    # TODO(synk): nn.Dropout(p=0.1) on the embedding is identity in eval mode;
    # train-mode stochastic masking (pltpu.prng_*) is not implemented.

    # attn_weights = softmax(Linear(cat(embedded, h)))  -- split-matmul form.
    attn_logits = (jnp.dot(embedded, wattn_ref[0:H, :],
                           preferred_element_type=jnp.float32)
                   + attn_logits_h + battn_ref[...])                    # (B, L)
    a_max = jnp.max(attn_logits, axis=1, keepdims=True)
    a_exp = jnp.exp(attn_logits - a_max)
    denom = jnp.sum(a_exp, axis=1, keepdims=True)
    attn_w = a_exp * pl.reciprocal(denom, approx=True)                  # EUP divide
    attnw_ref[...] = attn_w
    # NOTE: L=10 means the (B, L) store and the (2H, L) matmul are lane-sparse;
    # if max_length ever grows, pad L to a multiple of 128 in the wrapper.

    # attn_applied[b] = attn_w[b] @ enc[b]; L is tiny so a VPU broadcast-multiply
    # + sum over L beats any batched-matmul / masked-matmul formulation.
    attn_applied = attn_w[:, 0:1] * enc_ref[:, 0, :]
    for l in range(1, L):
        attn_applied = attn_applied + attn_w[:, l:l + 1] * enc_ref[:, l, :]

    # attn_combine + ReLU
    x = (jnp.dot(embedded, wcomb_ref[0:H, :], preferred_element_type=jnp.float32)
         + jnp.dot(attn_applied, wcomb_ref[H:2 * H, :],
                   preferred_element_type=jnp.float32)
         + bcomb_ref[...])
    x = jnp.maximum(x, 0.0)

    # GRU cell: gates fused into (B, 3H) matmuls (PyTorch order r, z, n).
    gi = jnp.dot(x, wih_ref[...], preferred_element_type=jnp.float32) + bih_ref[...]
    r = jax.nn.sigmoid(gi[:, 0:H] + gh[:, 0:H])
    z = jax.nn.sigmoid(gi[:, H:2 * H] + gh[:, H:2 * H])
    n = jnp.tanh(gi[:, 2 * H:3 * H] + r * gh[:, 2 * H:3 * H])
    hnew_ref[...] = (1.0 - z) * n + z * h


# -----------------------------------------------------------------------------
# Kernel B: tiled vocab projection, one independent vocab tile per grid step.
# Each tile writes raw logits plus its partial logsumexp stats (m, l), so the
# vocab axis can be marked "parallel" (v7x megacore) and the final combine /
# normalize is a cheap order-independent wrapper epilogue.
# -----------------------------------------------------------------------------
def _vocab_tile_kernel(h_ref,                      # VMEM (B, H)
                       wout_ref, bout_ref,         # VMEM (H, TV), (1, TV)
                       logits_ref,                 # out  (B, TV) block of (B, V)
                       m_ref, l_ref):              # out  (B, 128) blocks (stats)
    logits = (jnp.dot(h_ref[...], wout_ref[...].astype(jnp.float32),
                      preferred_element_type=jnp.float32)
              + bout_ref[...].astype(jnp.float32))                      # (B, TV)
    logits_ref[...] = logits
    m = jnp.max(logits, axis=1, keepdims=True)                          # (B, 1)
    l = jnp.sum(jnp.exp(logits - m), axis=1, keepdims=True)             # (B, 1)
    # Lane-broadcast the per-tile scalars to a full 128-lane block so the
    # stats stores stay unmasked / lane-dense.
    m_ref[...] = jnp.broadcast_to(m, m_ref.shape)
    l_ref[...] = jnp.broadcast_to(l, l_ref.shape)


def attn_decoder_forward(params, token_ids, hidden, encoder_outputs, *,
                         tile_v=512, wout_dtype=jnp.float32):
    """One AttnDecoderRNN step.

    token_ids:        (B,)       int32
    hidden:           (1, B, H)  float32  (PyTorch GRU hidden layout)
    encoder_outputs:  (B, L, H)  float32
    returns: (log_probs (B, V), hidden (1, B, H), attn_weights (B, L))
    """
    B = token_ids.shape[0]
    V, H = params["emb"].shape
    L = encoder_outputs.shape[1]
    tile_v = min(tile_v, V)
    assert V % tile_v == 0 and tile_v % 128 == 0, \
        "pad the vocabulary to a multiple of tile_v (tile_v multiple of 128)"
    nv = V // tile_v
    h0 = hidden[0]

    # Pre-transpose weights to (in, out) layout so the kernels never transpose.
    wattn_t = params["w_attn"].T                 # (2H, L)
    wcomb_t = params["w_comb"].T                 # (2H, H)
    wih_t = params["w_ih"].T                     # (H, 3H)
    whh_t = params["w_hh"].T                     # (H, 3H)
    wout_t = params["w_out"].T.astype(wout_dtype)            # (H, V), streamed
    bout = params["b_out"].reshape(1, V).astype(wout_dtype)  # (1, V)

    # ---------------- Kernel A: gather + attention + GRU ---------------------
    c2 = lambda i, ids: (0, 0)
    c3 = lambda i, ids: (0, 0, 0)
    f32 = 4
    prologue_bytes = 2 * f32 * (B * H + B * L * H
                                + 2 * H * L + L
                                + 2 * H * H + H
                                + 2 * (H * 3 * H) + 2 * 3 * H
                                + B * H + B * L) + f32 * B * H

    h_new, attn_w = pl.pallas_call(
        _prologue_kernel,
        grid_spec=pltpu.PrefetchScalarGridSpec(
            num_scalar_prefetch=1,
            grid=(1,),
            in_specs=[
                pl.BlockSpec(memory_space=pl.ANY),            # embedding table (HBM)
                pl.BlockSpec((B, H), c2),                     # h0
                pl.BlockSpec((B, L, H), c3),                  # encoder outputs
                pl.BlockSpec((2 * H, L), c2),                 # attn weight^T
                pl.BlockSpec((1, L), c2),                     # attn bias
                pl.BlockSpec((2 * H, H), c2),                 # attn_combine weight^T
                pl.BlockSpec((1, H), c2),                     # attn_combine bias
                pl.BlockSpec((H, 3 * H), c2),                 # GRU W_ih^T
                pl.BlockSpec((H, 3 * H), c2),                 # GRU W_hh^T
                pl.BlockSpec((1, 3 * H), c2),                 # GRU b_ih
                pl.BlockSpec((1, 3 * H), c2),                 # GRU b_hh
            ],
            out_specs=[
                pl.BlockSpec((B, H), c2),                     # new hidden
                pl.BlockSpec((B, L), c2),                     # attention weights
            ],
            scratch_shapes=[
                pltpu.VMEM((B, H), jnp.float32),              # gathered embedding rows
                pltpu.SemaphoreType.DMA((B,)),                # gather semaphores
            ],
        ),
        out_shape=(jax.ShapeDtypeStruct((B, H), jnp.float32),
                   jax.ShapeDtypeStruct((B, L), jnp.float32)),
        compiler_params=pltpu.CompilerParams(
            dimension_semantics=("arbitrary",),
            vmem_limit_bytes=_vmem_limit(prologue_bytes)),
    )(token_ids.astype(jnp.int32),
      params["emb"],
      h0,
      encoder_outputs,
      wattn_t, params["b_attn"].reshape(1, L),
      wcomb_t, params["b_comb"].reshape(1, H),
      wih_t, whh_t,
      params["b_ih"].reshape(1, 3 * H), params["b_hh"].reshape(1, 3 * H))

    # ---------------- Kernel B: streamed vocab projection ---------------------
    w_isz = jnp.dtype(wout_dtype).itemsize
    vocab_step_bytes = 2 * ((H * tile_v + tile_v) * w_isz       # W_out/b_out tiles
                            + B * H * f32                       # h_new
                            + B * tile_v * f32                  # logits tile
                            + 2 * B * 128 * f32)                # (m, l) stat tiles

    logits, m_pad, l_pad = pl.pallas_call(
        _vocab_tile_kernel,
        grid_spec=pltpu.PrefetchScalarGridSpec(
            num_scalar_prefetch=0,
            grid=(nv,),
            in_specs=[
                pl.BlockSpec((B, H), lambda j: (0, 0)),            # h_new (resident)
                pl.BlockSpec((H, tile_v), lambda j: (0, j)),       # W_out^T tile
                pl.BlockSpec((1, tile_v), lambda j: (0, j)),       # b_out tile
            ],
            out_specs=[
                pl.BlockSpec((B, tile_v), lambda j: (0, j)),       # raw logits tile
                pl.BlockSpec((B, 128), lambda j: (0, j)),          # per-tile max
                pl.BlockSpec((B, 128), lambda j: (0, j)),          # per-tile sum-exp
            ],
        ),
        out_shape=(jax.ShapeDtypeStruct((B, V), jnp.float32),
                   jax.ShapeDtypeStruct((B, nv * 128), jnp.float32),
                   jax.ShapeDtypeStruct((B, nv * 128), jnp.float32)),
        compiler_params=pltpu.CompilerParams(
            dimension_semantics=("parallel",),                     # v7x: 2 TCs stream half each
            vmem_limit_bytes=_vmem_limit(vocab_step_bytes)),
    )(h_new, wout_t, bout)

    # Order-independent logsumexp combine + normalize (cheap epilogue on (B, V)).
    m_t = m_pad[:, ::128]                                          # (B, nv)
    l_t = l_pad[:, ::128]                                          # (B, nv)
    m_all = jnp.max(m_t, axis=1, keepdims=True)
    l_all = jnp.sum(l_t * jnp.exp(m_t - m_all), axis=1, keepdims=True)
    lse = m_all + jnp.log(l_all)                                   # (B, 1)
    logp = logits - lse

    return logp, h_new[None], attn_w


def _reference_forward(params, token_ids, hidden, encoder_outputs):
    """Pure-JAX replica of the PyTorch AttnDecoderRNN.forward (eval mode)."""
    H = params["emb"].shape[1]
    emb = params["emb"][token_ids]                                 # (B, H)
    h = hidden[0]
    attn_logits = jnp.concatenate([emb, h], 1) @ params["w_attn"].T + params["b_attn"]
    attn_w = jax.nn.softmax(attn_logits, axis=1)                   # (B, L)
    attn_applied = jnp.einsum("bl,blh->bh", attn_w, encoder_outputs)
    x = jnp.concatenate([emb, attn_applied], 1) @ params["w_comb"].T + params["b_comb"]
    x = jax.nn.relu(x)
    gi = x @ params["w_ih"].T + params["b_ih"]
    gh = h @ params["w_hh"].T + params["b_hh"]
    r = jax.nn.sigmoid(gi[:, 0:H] + gh[:, 0:H])
    z = jax.nn.sigmoid(gi[:, H:2 * H] + gh[:, H:2 * H])
    n = jnp.tanh(gi[:, 2 * H:] + r * gh[:, 2 * H:])
    h_new = (1.0 - z) * n + z * h
    logits = h_new @ params["w_out"].T + params["b_out"]
    return jax.nn.log_softmax(logits, axis=1), h_new[None], attn_w


def init_params(key, hidden_size, output_size, max_length):
    H, V, L = hidden_size, output_size, max_length
    ks = jax.random.split(key, 11)

    def unif(k, shape, fan_in):
        s = 1.0 / np.sqrt(fan_in)
        return jax.random.uniform(k, shape, jnp.float32, -s, s)

    return {
        "emb":    jax.random.normal(ks[0], (V, H), jnp.float32),
        "w_attn": unif(ks[1], (L, 2 * H), 2 * H),
        "b_attn": unif(ks[2], (L,), 2 * H),
        "w_comb": unif(ks[3], (H, 2 * H), 2 * H),
        "b_comb": unif(ks[4], (H,), 2 * H),
        "w_ih":   unif(ks[5], (3 * H, H), H),
        "w_hh":   unif(ks[6], (3 * H, H), H),
        "b_ih":   unif(ks[7], (3 * H,), H),
        "b_hh":   unif(ks[8], (3 * H,), H),
        "w_out":  unif(ks[9], (V, H), H),
        "b_out":  unif(ks[10], (V,), H),
    }


if __name__ == "__main__":
    batch = 8          # fills vreg sublanes
    hidden_size = 128  # lane-aligned
    output_size = 2048 # vocab, multiple of TILE_V=512 -> 4 vocab tiles
    max_length = 10    # MAX_LENGTH from the PyTorch module

    key = jax.random.PRNGKey(0)
    kp, kt, kh, ke = jax.random.split(key, 4)

    params = init_params(kp, hidden_size, output_size, max_length)
    token_ids = jax.random.randint(kt, (batch,), 0, output_size, jnp.int32)
    hidden = jax.random.normal(kh, (1, batch, hidden_size), jnp.float32)
    encoder_outputs = jax.random.normal(ke, (batch, max_length, hidden_size), jnp.float32)

    logp, h_new, attn_w = attn_decoder_forward(params, token_ids, hidden,
                                               encoder_outputs, tile_v=512)
    jax.block_until_ready((logp, h_new, attn_w))

    # correctness check against the pure-JAX reference (tolerance accounts for
    # the EUP approximate reciprocal in the attention softmax)
    ref_logp, ref_h, ref_aw = _reference_forward(params, token_ids, hidden, encoder_outputs)
    np.testing.assert_allclose(np.asarray(logp), np.asarray(ref_logp), rtol=1e-3, atol=1e-3)
    np.testing.assert_allclose(np.asarray(h_new), np.asarray(ref_h), rtol=1e-3, atol=1e-3)
    np.testing.assert_allclose(np.asarray(attn_w), np.asarray(ref_aw), rtol=1e-3, atol=1e-3)

    print("KERNEL_OK")
</pallas_src>

<mosaic_0001>
module attributes {stable_mosaic.version = 11 : i64} {
  func.func @_prologue_kernel(%arg0: i32, %arg1: memref<8xi32, #tpu.memory_space<smem>>, %arg2: memref<2048x128xf32, #tpu.memory_space<any>>, %arg3: memref<8x128xf32, #tpu.memory_space<vmem>>, %arg4: memref<8x10x128xf32, #tpu.memory_space<vmem>>, %arg5: memref<256x10xf32, #tpu.memory_space<vmem>>, %arg6: memref<1x10xf32, #tpu.memory_space<vmem>>, %arg7: memref<256x128xf32, #tpu.memory_space<vmem>>, %arg8: memref<1x128xf32, #tpu.memory_space<vmem>>, %arg9: memref<128x384xf32, #tpu.memory_space<vmem>>, %arg10: memref<128x384xf32, #tpu.memory_space<vmem>>, %arg11: memref<1x384xf32, #tpu.memory_space<vmem>>, %arg12: memref<1x384xf32, #tpu.memory_space<vmem>>, %arg13: memref<8x128xf32, #tpu.memory_space<vmem>>, %arg14: memref<8x10xf32, #tpu.memory_space<vmem>>, %arg15: memref<8x128xf32, #tpu.memory_space<vmem>>, %arg16: memref<8x!tpu.dma_semaphore, #tpu.memory_space<semaphore_mem>>) attributes {dimension_semantics = [#tpu.dimension_semantics<arbitrary>], iteration_bounds = array<i64: 1>, scalar_prefetch = 1 : i64, scratch_operands = 2 : i64, tpu.core_type = #tpu.core_type<tc>, window_params = [{}, {pipeline_mode = #tpu.pipeline_mode<synchronous>, transform_indices = @transform_1, window_bounds = array<i64: 8, 128>}, {pipeline_mode = #tpu.pipeline_mode<synchronous>, transform_indices = @transform_2, window_bounds = array<i64: 8, 10, 128>}, {pipeline_mode = #tpu.pipeline_mode<synchronous>, transform_indices = @transform_3, window_bounds = array<i64: 256, 10>}, {pipeline_mode = #tpu.pipeline_mode<synchronous>, transform_indices = @transform_4, window_bounds = array<i64: 1, 10>}, {pipeline_mode = #tpu.pipeline_mode<synchronous>, transform_indices = @transform_5, window_bounds = array<i64: 256, 128>}, {pipeline_mode = #tpu.pipeline_mode<synchronous>, transform_indices = @transform_6, window_bounds = array<i64: 1, 128>}, {pipeline_mode = #tpu.pipeline_mode<synchronous>, transform_indices = @transform_7, window_bounds = array<i64: 128, 384>}, {pipeline_mode = #tpu.pipeline_mode<synchronous>, transform_indices = @transform_8, window_bounds = array<i64: 128, 384>}, {pipeline_mode = #tpu.pipeline_mode<synchronous>, transform_indices = @transform_9, window_bounds = array<i64: 1, 384>}, {pipeline_mode = #tpu.pipeline_mode<synchronous>, transform_indices = @transform_10, window_bounds = array<i64: 1, 384>}, {pipeline_mode = #tpu.pipeline_mode<synchronous>, transform_indices = @transform_11, window_bounds = array<i64: 8, 128>}, {pipeline_mode = #tpu.pipeline_mode<synchronous>, transform_indices = @transform_12, window_bounds = array<i64: 8, 10>}]} {
    %c0 = arith.constant 0 : index
    %0 = memref.load %arg1[%c0] : memref<8xi32, #tpu.memory_space<smem>>
    %c0_i32 = arith.constant 0 : i32
    %c0_i32_0 = arith.constant 0 : i32
    %1 = tpu.memref_slice %arg2[%0, %c0_i32_0] : memref<2048x128xf32, #tpu.memory_space<any>> -> memref<1x128xf32, #tpu.memory_space<any>>
    %c0_i32_1 = arith.constant 0 : i32
    %c0_i32_2 = arith.constant 0 : i32
    %2 = tpu.memref_slice %arg15[%c0_i32_1, %c0_i32_2] : memref<8x128xf32, #tpu.memory_space<vmem>> -> memref<1x128xf32, #tpu.memory_space<vmem>>
    %3 = tpu.memref_slice %arg16[%c0_i32] : memref<8x!tpu.dma_semaphore, #tpu.memory_space<semaphore_mem>> -> memref<1x!tpu.dma_semaphore, #tpu.memory_space<semaphore_mem>>
    %4 = tpu.memref_squeeze %3 : memref<1x!tpu.dma_semaphore, #tpu.memory_space<semaphore_mem>> -> memref<!tpu.dma_semaphore, #tpu.memory_space<semaphore_mem>>
    tpu.enqueue_dma source(%1 : memref<1x128xf32, #tpu.memory_space<any>>) target(%2 : memref<1x128xf32, #tpu.memory_space<vmem>>) target_semaphore(%4 : memref<!tpu.dma_semaphore, #tpu.memory_space<semaphore_mem>>)
    %c1 = arith.constant 1 : index
    %5 = memref.load %arg1[%c1] : memref<8xi32, #tpu.memory_space<smem>>
    %c1_i32 = arith.constant 1 : i32
    %c0_i32_3 = arith.constant 0 : i32
    %6 = tpu.memref_slice %arg2[%5, %c0_i32_3] : memref<2048x128xf32, #tpu.memory_space<any>> -> memref<1x128xf32, #tpu.memory_space<any>>
    %c1_i32_4 = arith.constant 1 : i32
    %c0_i32_5 = arith.constant 0 : i32
    %7 = tpu.memref_slice %arg15[%c1_i32_4, %c0_i32_5] : memref<8x128xf32, #tpu.memory_space<vmem>> -> memref<1x128xf32, #tpu.memory_space<vmem>>
    %8 = tpu.memref_slice %arg16[%c1_i32] : memref<8x!tpu.dma_semaphore, #tpu.memory_space<semaphore_mem>> -> memref<1x!tpu.dma_semaphore, #tpu.memory_space<semaphore_mem>>
    %9 = tpu.memref_squeeze %8 : memref<1x!tpu.dma_semaphore, #tpu.memory_space<semaphore_mem>> -> memref<!tpu.dma_semaphore, #tpu.memory_space<semaphore_mem>>
    tpu.enqueue_dma source(%6 : memref<1x128xf32, #tpu.memory_space<any>>) target(%7 : memref<1x128xf32, #tpu.memory_space<vmem>>) target_semaphore(%9 : memref<!tpu.dma_semaphore, #tpu.memory_space<semaphore_mem>>)
    %c2 = arith.constant 2 : index
    %10 = memref.load %arg1[%c2] : memref<8xi32, #tpu.memory_space<smem>>
    %c2_i32 = arith.constant 2 : i32
    %c0_i32_6 = arith.constant 0 : i32
    %11 = tpu.memref_slice %arg2[%10, %c0_i32_6] : memref<2048x128xf32, #tpu.memory_space<any>> -> memref<1x128xf32, #tpu.memory_space<any>>
    %c2_i32_7 = arith.constant 2 : i32
    %c0_i32_8 = arith.constant 0 : i32
    %12 = tpu.memref_slice %arg15[%c2_i32_7, %c0_i32_8] : memref<8x128xf32, #tpu.memory_space<vmem>> -> memref<1x128xf32, #tpu.memory_space<vmem>>
    %13 = tpu.memref_slice %arg16[%c2_i32] : memref<8x!tpu.dma_semaphore, #tpu.memory_space<semaphore_mem>> -> memref<1x!tpu.dma_semaphore, #tpu.memory_space<semaphore_mem>>
    %14 = tpu.memref_squeeze %13 : memref<1x!tpu.dma_semaphore, #tpu.memory_space<semaphore_mem>> -> memref<!tpu.dma_semaphore, #tpu.memory_space<semaphore_mem>>
    tpu.enqueue_dma source(%11 : memref<1x128xf32, #tpu.memory_space<any>>) target(%12 : memref<1x128xf32, #tpu.memory_space<vmem>>) target_semaphore(%14 : memref<!tpu.dma_semaphore, #tpu.memory_space<semaphore_mem>>)
    %c3 = arith.constant 3 : index
    %15 = memref.load %arg1[%c3] : memref<8xi32, #tpu.memory_space<smem>>
    %c3_i32 = arith.constant 3 : i32
    %c0_i32_9 = arith.constant 0 : i32
    %16 = tpu.memref_slice %arg2[%15, %c0_i32_9] : memref<2048x128xf32, #tpu.memory_space<any>> -> memref<1x128xf32, #tpu.memory_space<any>>
    %c3_i32_10 = arith.constant 3 : i32
    %c0_i32_11 = arith.constant 0 : i32
    %17 = tpu.memref_slice %arg15[%c3_i32_10, %c0_i32_11] : memref<8x128xf32, #tpu.memory_space<vmem>> -> memref<1x128xf32, #tpu.memory_space<vmem>>
    %18 = tpu.memref_slice %arg16[%c3_i32] : memref<8x!tpu.dma_semaphore, #tpu.memory_space<semaphore_mem>> -> memref<1x!tpu.dma_semaphore, #tpu.memory_space<semaphore_mem>>
    %19 = tpu.memref_squeeze %18 : memref<1x!tpu.dma_semaphore, #tpu.memory_space<semaphore_mem>> -> memref<!tpu.dma_semaphore, #tpu.memory_space<semaphore_mem>>
    tpu.enqueue_dma source(%16 : memref<1x128xf32, #tpu.memory_space<any>>) target(%17 : memref<1x128xf32, #tpu.memory_space<vmem>>) target_semaphore(%19 : memref<!tpu.dma_semaphore, #tpu.memory_space<semaphore_mem>>)
    %c4 = arith.constant 4 : index
    %20 = memref.load %arg1[%c4] : memref<8xi32, #tpu.memory_space<smem>>
    %c4_i32 = arith.constant 4 : i32
    %c0_i32_12 = arith.constant 0 : i32
    %21 = tpu.memref_slice %arg2[%20, %c0_i32_12] : memref<2048x128xf32, #tpu.memory_space<any>> -> memref<1x128xf32, #tpu.memory_space<any>>
    %c4_i32_13 = arith.constant 4 : i32
    %c0_i32_14 = arith.constant 0 : i32
    %22 = tpu.memref_slice %arg15[%c4_i32_13, %c0_i32_14] : memref<8x128xf32, #tpu.memory_space<vmem>> -> memref<1x128xf32, #tpu.memory_space<vmem>>
    %23 = tpu.memref_slice %arg16[%c4_i32] : memref<8x!tpu.dma_semaphore, #tpu.memory_space<semaphore_mem>> -> memref<1x!tpu.dma_semaphore, #tpu.memory_space<semaphore_mem>>
    %24 = tpu.memref_squeeze %23 : memref<1x!tpu.dma_semaphore, #tpu.memory_space<semaphore_mem>> -> memref<!tpu.dma_semaphore, #tpu.memory_space<semaphore_mem>>
    tpu.enqueue_dma source(%21 : memref<1x128xf32, #tpu.memory_space<any>>) target(%22 : memref<1x128xf32, #tpu.memory_space<vmem>>) target_semaphore(%24 : memref<!tpu.dma_semaphore, #tpu.memory_space<semaphore_mem>>)
    %c5 = arith.constant 5 : index
    %25 = memref.load %arg1[%c5] : memref<8xi32, #tpu.memory_space<smem>>
    %c5_i32 = arith.constant 5 : i32
    %c0_i32_15 = arith.constant 0 : i32
    %26 = tpu.memref_slice %arg2[%25, %c0_i32_15] : memref<2048x128xf32, #tpu.memory_space<any>> -> memref<1x128xf32, #tpu.memory_space<any>>
    %c5_i32_16 = arith.constant 5 : i32
    %c0_i32_17 = arith.constant 0 : i32
    %27 = tpu.memref_slice %arg15[%c5_i32_16, %c0_i32_17] : memref<8x128xf32, #tpu.memory_space<vmem>> -> memref<1x128xf32, #tpu.memory_space<vmem>>
    %28 = tpu.memref_slice %arg16[%c5_i32] : memref<8x!tpu.dma_semaphore, #tpu.memory_space<semaphore_mem>> -> memref<1x!tpu.dma_semaphore, #tpu.memory_space<semaphore_mem>>
    %29 = tpu.memref_squeeze %28 : memref<1x!tpu.dma_semaphore, #tpu.memory_space<semaphore_mem>> -> memref<!tpu.dma_semaphore, #tpu.memory_space<semaphore_mem>>
    tpu.enqueue_dma source(%26 : memref<1x128xf32, #tpu.memory_space<any>>) target(%27 : memref<1x128xf32, #tpu.memory_space<vmem>>) target_semaphore(%29 : memref<!tpu.dma_semaphore, #tpu.memory_space<semaphore_mem>>)
    %c6 = arith.constant 6 : index
    %30 = memref.load %arg1[%c6] : memref<8xi32, #tpu.memory_space<smem>>
    %c6_i32 = arith.constant 6 : i32
    %c0_i32_18 = arith.constant 0 : i32
    %31 = tpu.memref_slice %arg2[%30, %c0_i32_18] : memref<2048x128xf32, #tpu.memory_space<any>> -> memref<1x128xf32, #tpu.memory_space<any>>
    %c6_i32_19 = arith.constant 6 : i32
    %c0_i32_20 = arith.constant 0 : i32
    %32 = tpu.memref_slice %arg15[%c6_i32_19, %c0_i32_20] : memref<8x128xf32, #tpu.memory_space<vmem>> -> memref<1x128xf32, #tpu.memory_space<vmem>>
    %33 = tpu.memref_slice %arg16[%c6_i32] : memref<8x!tpu.dma_semaphore, #tpu.memory_space<semaphore_mem>> -> memref<1x!tpu.dma_semaphore, #tpu.memory_space<semaphore_mem>>
    %34 = tpu.memref_squeeze %33 : memref<1x!tpu.dma_semaphore, #tpu.memory_space<semaphore_mem>> -> memref<!tpu.dma_semaphore, #tpu.memory_space<semaphore_mem>>
    tpu.enqueue_dma source(%31 : memref<1x128xf32, #tpu.memory_space<any>>) target(%32 : memref<1x128xf32, #tpu.memory_space<vmem>>) target_semaphore(%34 : memref<!tpu.dma_semaphore, #tpu.memory_space<semaphore_mem>>)
    %c7 = arith.constant 7 : index
    %35 = memref.load %arg1[%c7] : memref<8xi32, #tpu.memory_space<smem>>
    %c7_i32 = arith.constant 7 : i32
    %c0_i32_21 = arith.constant 0 : i32
    %36 = tpu.memref_slice %arg2[%35, %c0_i32_21] : memref<2048x128xf32, #tpu.memory_space<any>> -> memref<1x128xf32, #tpu.memory_space<any>>
    %c7_i32_22 = arith.constant 7 : i32
    %c0_i32_23 = arith.constant 0 : i32
    %37 = tpu.memref_slice %arg15[%c7_i32_22, %c0_i32_23] : memref<8x128xf32, #tpu.memory_space<vmem>> -> memref<1x128xf32, #tpu.memory_space<vmem>>
    %38 = tpu.memref_slice %arg16[%c7_i32] : memref<8x!tpu.dma_semaphore, #tpu.memory_space<semaphore_mem>> -> memref<1x!tpu.dma_semaphore, #tpu.memory_space<semaphore_mem>>
    %39 = tpu.memref_squeeze %38 : memref<1x!tpu.dma_semaphore, #tpu.memory_space<semaphore_mem>> -> memref<!tpu.dma_semaphore, #tpu.memory_space<semaphore_mem>>
    tpu.enqueue_dma source(%36 : memref<1x128xf32, #tpu.memory_space<any>>) target(%37 : memref<1x128xf32, #tpu.memory_space<vmem>>) target_semaphore(%39 : memref<!tpu.dma_semaphore, #tpu.memory_space<semaphore_mem>>)
    %c0_24 = arith.constant 0 : index
    %c0_25 = arith.constant 0 : index
    %40 = vector.load %arg3[%c0_24, %c0_25] : memref<8x128xf32, #tpu.memory_space<vmem>>, vector<8x128xf32>
    %c128 = arith.constant 128 : index
    %c0_26 = arith.constant 0 : index
    %41 = vector.load %arg5[%c128, %c0_26] : memref<256x10xf32, #tpu.memory_space<vmem>>, vector<128x10xf32>
    %cst = arith.constant dense<0.000000e+00> : vector<8x10xf32>
    %42 = tpu.matmul %40, %41, %cst {dimension_numbers = #tpu.dot_dimension_numbers<[1], [0], [0], [1], [0, 0, 1, 1], [], []>} : vector<8x128xf32>, vector<128x10xf32>, vector<8x10xf32> -> vector<8x10xf32>
    %c0_27 = arith.constant 0 : index
    %c0_28 = arith.constant 0 : index
    %43 = vector.load %arg10[%c0_27, %c0_28] : memref<128x384xf32, #tpu.memory_space<vmem>>, vector<128x384xf32>
    %cst_29 = arith.constant dense<0.000000e+00> : vector<8x384xf32>
    %44 = tpu.matmul %40, %43, %cst_29 {dimension_numbers = #tpu.dot_dimension_numbers<[1], [0], [0], [1], [0, 0, 1, 1], [], []>} : vector<8x128xf32>, vector<128x384xf32>, vector<8x384xf32> -> vector<8x384xf32>
    %c0_30 = arith.constant 0 : index
    %c0_31 = arith.constant 0 : index
    %45 = vector.load %arg12[%c0_30, %c0_31] : memref<1x384xf32, #tpu.memory_space<vmem>>, vector<1x384xf32>
    %46 = vector.broadcast %45 : vector<1x384xf32> to vector<8x384xf32>
    %47 = arith.addf %44, %46 : vector<8x384xf32>
    %c0_i32_32 = arith.constant 0 : i32
    %c0_i32_33 = arith.constant 0 : i32
    %48 = tpu.memref_slice %arg2[%0, %c0_i32_33] : memref<2048x128xf32, #tpu.memory_space<any>> -> memref<1x128xf32, #tpu.memory_space<any>>
    %c0_i32_34 = arith.constant 0 : i32
    %c0_i32_35 = arith.constant 0 : i32
    %49 = tpu.memref_slice %arg15[%c0_i32_34, %c0_i32_35] : memref<8x128xf32, #tpu.memory_space<vmem>> -> memref<1x128xf32, #tpu.memory_space<vmem>>
    %50 = tpu.memref_slice %arg16[%c0_i32_32] : memref<8x!tpu.dma_semaphore, #tpu.memory_space<semaphore_mem>> -> memref<1x!tpu.dma_semaphore, #tpu.memory_space<semaphore_mem>>
    %51 = tpu.memref_squeeze %50 : memref<1x!tpu.dma_semaphore, #tpu.memory_space<semaphore_mem>> -> memref<!tpu.dma_semaphore, #tpu.memory_space<semaphore_mem>>
    tpu.wait_dma2 semaphore(%51 : memref<!tpu.dma_semaphore, #tpu.memory_space<semaphore_mem>>) src(%48 : memref<1x128xf32, #tpu.memory_space<any>>) dst(%49 : memref<1x128xf32, #tpu.memory_space<vmem>>)
    %c1_i32_36 = arith.constant 1 : i32
    %c0_i32_37 = arith.constant 0 : i32
    %52 = tpu.memref_slice %arg2[%5, %c0_i32_37] : memref<2048x128xf32, #tpu.memory_space<any>> -> memref<1x128xf32, #tpu.memory_space<any>>
    %c1_i32_38 = arith.constant 1 : i32
    %c0_i32_39 = arith.constant 0 : i32
    %53 = tpu.memref_slice %arg15[%c1_i32_38, %c0_i32_39] : memref<8x128xf32, #tpu.memory_space<vmem>> -> memref<1x128xf32, #tpu.memory_space<vmem>>
    %54 = tpu.memref_slice %arg16[%c1_i32_36] : memref<8x!tpu.dma_semaphore, #tpu.memory_space<semaphore_mem>> -> memref<1x!tpu.dma_semaphore, #tpu.memory_space<semaphore_mem>>
    %55 = tpu.memref_squeeze %54 : memref<1x!tpu.dma_semaphore, #tpu.memory_space<semaphore_mem>> -> memref<!tpu.dma_semaphore, #tpu.memory_space<semaphore_mem>>
    tpu.wait_dma2 semaphore(%55 : memref<!tpu.dma_semaphore, #tpu.memory_space<semaphore_mem>>) src(%52 : memref<1x128xf32, #tpu.memory_space<any>>) dst(%53 : memref<1x128xf32, #tpu.memory_space<vmem>>)
    %c2_i32_40 = arith.constant 2 : i32
    %c0_i32_41 = arith.constant 0 : i32
    %56 = tpu.memref_slice %arg2[%10, %c0_i32_41] : memref<2048x128xf32, #tpu.memory_space<any>> -> memref<1x128xf32, #tpu.memory_space<any>>
    %c2_i32_42 = arith.constant 2 : i32
    %c0_i32_43 = arith.constant 0 : i32
    %57 = tpu.memref_slice %arg15[%c2_i32_42, %c0_i32_43] : memref<8x128xf32, #tpu.memory_space<vmem>> -> memref<1x128xf32, #tpu.memory_space<vmem>>
    %58 = tpu.memref_slice %arg16[%c2_i32_40] : memref<8x!tpu.dma_semaphore, #tpu.memory_space<semaphore_mem>> -> memref<1x!tpu.dma_semaphore, #tpu.memory_space<semaphore_mem>>
    %59 = tpu.memref_squeeze %58 : memref<1x!tpu.dma_semaphore, #tpu.memory_space<semaphore_mem>> -> memref<!tpu.dma_semaphore, #tpu.memory_space<semaphore_mem>>
    tpu.wait_dma2 semaphore(%59 : memref<!tpu.dma_semaphore, #tpu.memory_space<semaphore_mem>>) src(%56 : memref<1x128xf32, #tpu.memory_space<any>>) dst(%57 : memref<1x128xf32, #tpu.memory_space<vmem>>)
    %c3_i32_44 = arith.constant 3 : i32
    %c0_i32_45 = arith.constant 0 : i32
    %60 = tpu.memref_slice %arg2[%15, %c0_i32_45] : memref<2048x128xf32, #tpu.memory_space<any>> -> memref<1x128xf32, #tpu.memory_space<any>>
    %c3_i32_46 = arith.constant 3 : i32
    %c0_i32_47 = arith.constant 0 : i32
    %61 = tpu.memref_slice %arg15[%c3_i32_46, %c0_i32_47] : memref<8x128xf32, #tpu.memory_space<vmem>> -> memref<1x128xf32, #tpu.memory_space<vmem>>
    %62 = tpu.memref_slice %arg16[%c3_i32_44] : memref<8x!tpu.dma_semaphore, #tpu.memory_space<semaphore_mem>> -> memref<1x!tpu.dma_semaphore, #tpu.memory_space<semaphore_mem>>
    %63 = tpu.memref_squeeze %62 : memref<1x!tpu.dma_semaphore, #tpu.memory_space<semaphore_mem>> -> memref<!tpu.dma_semaphore, #tpu.memory_space<semaphore_mem>>
    tpu.wait_dma2 semaphore(%63 : memref<!tpu.dma_semaphore, #tpu.memory_space<semaphore_mem>>) src(%60 : memref<1x128xf32, #tpu.memory_space<any>>) dst(%61 : memref<1x128xf32, #tpu.memory_space<vmem>>)
    %c4_i32_48 = arith.constant 4 : i32
    %c0_i32_49 = arith.constant 0 : i32
    %64 = tpu.memref_slice %arg2[%20, %c0_i32_49] : memref<2048x128xf32, #tpu.memory_space<any>> -> memref<1x128xf32, #tpu.memory_space<any>>
    %c4_i32_50 = arith.constant 4 : i32
    %c0_i32_51 = arith.constant 0 : i32
    %65 = tpu.memref_slice %arg15[%c4_i32_50, %c0_i32_51] : memref<8x128xf32, #tpu.memory_space<vmem>> -> memref<1x128xf32, #tpu.memory_space<vmem>>
    %66 = tpu.memref_slice %arg16[%c4_i32_48] : memref<8x!tpu.dma_semaphore, #tpu.memory_space<semaphore_mem>> -> memref<1x!tpu.dma_semaphore, #tpu.memory_space<semaphore_mem>>
    %67 = tpu.memref_squeeze %66 : memref<1x!tpu.dma_semaphore, #tpu.memory_space<semaphore_mem>> -> memref<!tpu.dma_semaphore, #tpu.memory_space<semaphore_mem>>
    tpu.wait_dma2 semaphore(%67 : memref<!tpu.dma_semaphore, #tpu.memory_space<semaphore_mem>>) src(%64 : memref<1x128xf32, #tpu.memory_space<any>>) dst(%65 : memref<1x128xf32, #tpu.memory_space<vmem>>)
    %c5_i32_52 = arith.constant 5 : i32
    %c0_i32_53 = arith.constant 0 : i32
    %68 = tpu.memref_slice %arg2[%25, %c0_i32_53] : memref<2048x128xf32, #tpu.memory_space<any>> -> memref<1x128xf32, #tpu.memory_space<any>>
    %c5_i32_54 = arith.constant 5 : i32
    %c0_i32_55 = arith.constant 0 : i32
    %69 = tpu.memref_slice %arg15[%c5_i32_54, %c0_i32_55] : memref<8x128xf32, #tpu.memory_space<vmem>> -> memref<1x128xf32, #tpu.memory_space<vmem>>
    %70 = tpu.memref_slice %arg16[%c5_i32_52] : memref<8x!tpu.dma_semaphore, #tpu.memory_space<semaphore_mem>> -> memref<1x!tpu.dma_semaphore, #tpu.memory_space<semaphore_mem>>
    %71 = tpu.memref_squeeze %70 : memref<1x!tpu.dma_semaphore, #tpu.memory_space<semaphore_mem>> -> memref<!tpu.dma_semaphore, #tpu.memory_space<semaphore_mem>>
    tpu.wait_dma2 semaphore(%71 : memref<!tpu.dma_semaphore, #tpu.memory_space<semaphore_mem>>) src(%68 : memref<1x128xf32, #tpu.memory_space<any>>) dst(%69 : memref<1x128xf32, #tpu.memory_space<vmem>>)
    %c6_i32_56 = arith.constant 6 : i32
    %c0_i32_57 = arith.constant 0 : i32
    %72 = tpu.memref_slice %arg2[%30, %c0_i32_57] : memref<2048x128xf32, #tpu.memory_space<any>> -> memref<1x128xf32, #tpu.memory_space<any>>
    %c6_i32_58 = arith.constant 6 : i32
    %c0_i32_59 = arith.constant 0 : i32
    %73 = tpu.memref_slice %arg15[%c6_i32_58, %c0_i32_59] : memref<8x128xf32, #tpu.memory_space<vmem>> -> memref<1x128xf32, #tpu.memory_space<vmem>>
    %74 = tpu.memref_slice %arg16[%c6_i32_56] : memref<8x!tpu.dma_semaphore, #tpu.memory_space<semaphore_mem>> -> memref<1x!tpu.dma_semaphore, #tpu.memory_space<semaphore_mem>>
    %75 = tpu.memref_squeeze %74 : memref<1x!tpu.dma_semaphore, #tpu.memory_space<semaphore_mem>> -> memref<!tpu.dma_semaphore, #tpu.memory_space<semaphore_mem>>
    tpu.wait_dma2 semaphore(%75 : memref<!tpu.dma_semaphore, #tpu.memory_space<semaphore_mem>>) src(%72 : memref<1x128xf32, #tpu.memory_space<any>>) dst(%73 : memref<1x128xf32, #tpu.memory_space<vmem>>)
    %c7_i32_60 = arith.constant 7 : i32
    %c0_i32_61 = arith.constant 0 : i32
    %76 = tpu.memref_slice %arg2[%35, %c0_i32_61] : memref<2048x128xf32, #tpu.memory_space<any>> -> memref<1x128xf32, #tpu.memory_space<any>>
    %c7_i32_62 = arith.constant 7 : i32
    %c0_i32_63 = arith.constant 0 : i32
    %77 = tpu.memref_slice %arg15[%c7_i32_62, %c0_i32_63] : memref<8x128xf32, #tpu.memory_space<vmem>> -> memref<1x128xf32, #tpu.memory_space<vmem>>
    %78 = tpu.memref_slice %arg16[%c7_i32_60] : memref<8x!tpu.dma_semaphore, #tpu.memory_space<semaphore_mem>> -> memref<1x!tpu.dma_semaphore, #tpu.memory_space<semaphore_mem>>
    %79 = tpu.memref_squeeze %78 : memref<1x!tpu.dma_semaphore, #tpu.memory_space<semaphore_mem>> -> memref<!tpu.dma_semaphore, #tpu.memory_space<semaphore_mem>>
    tpu.wait_dma2 semaphore(%79 : memref<!tpu.dma_semaphore, #tpu.memory_space<semaphore_mem>>) src(%76 : memref<1x128xf32, #tpu.memory_space<any>>) dst(%77 : memref<1x128xf32, #tpu.memory_space<vmem>>)
    %c0_64 = arith.constant 0 : index
    %c0_65 = arith.constant 0 : index
    %80 = vector.load %arg15[%c0_64, %c0_65] : memref<8x128xf32, #tpu.memory_space<vmem>>, vector<8x128xf32>
    %c0_66 = arith.constant 0 : index
    %c0_67 = arith.constant 0 : index
    %81 = vector.load %arg5[%c0_66, %c0_67] : memref<256x10xf32, #tpu.memory_space<vmem>>, vector<128x10xf32>
    %cst_68 = arith.constant dense<0.000000e+00> : vector<8x10xf32>
    %82 = tpu.matmul %80, %81, %cst_68 {dimension_numbers = #tpu.dot_dimension_numbers<[1], [0], [0], [1], [0, 0, 1, 1], [], []>} : vector<8x128xf32>, vector<128x10xf32>, vector<8x10xf32> -> vector<8x10xf32>
    %83 = arith.addf %82, %42 : vector<8x10xf32>
    %c0_69 = arith.constant 0 : index
    %c0_70 = arith.constant 0 : index
    %84 = vector.load %arg6[%c0_69, %c0_70] : memref<1x10xf32, #tpu.memory_space<vmem>>, vector<1x10xf32>
    %85 = vector.broadcast %84 : vector<1x10xf32> to vector<8x10xf32>
    %86 = arith.addf %83, %85 : vector<8x10xf32>
    %cst_71 = arith.constant dense<0xFF800000> : vector<8xf32>
    %87 = vector.multi_reduction <maximumf>, %86, %cst_71 [1] : vector<8x10xf32> to vector<8xf32>
    %88 = vector.shape_cast %87 : vector<8xf32> to vector<8x1xf32>
    %89 = vector.broadcast %88 : vector<8x1xf32> to vector<8x10xf32>
    %90 = arith.subf %86, %89 : vector<8x10xf32>
    %91 = math.exp %90 : vector<8x10xf32>
    %cst_72 = arith.constant dense<0.000000e+00> : vector<8xf32>
    %92 = vector.multi_reduction <add>, %91, %cst_72 [1] : vector<8x10xf32> to vector<8xf32>
    %93 = vector.shape_cast %92 : vector<8xf32> to vector<8x1xf32>
    %94 = tpu.reciprocal %93 {approx = true} : vector<8x1xf32> -> vector<8x1xf32>
    %95 = vector.broadcast %94 : vector<8x1xf32> to vector<8x10xf32>
    %96 = arith.mulf %91, %95 : vector<8x10xf32>
    %c0_73 = arith.constant 0 : index
    %c0_74 = arith.constant 0 : index
    %97 = vector.load %arg14[%c0_73, %c0_74] : memref<8x10xf32, #tpu.memory_space<vmem>>, vector<8x10xf32>
    tpu.vector_store %arg14[%c0_73, %c0_74], %96 {strides = array<i32>} : memref<8x10xf32, #tpu.memory_space<vmem>>, vector<8x10xf32>,
    %98 = vector.extract_strided_slice %96 {offsets = [0, 0], sizes = [8, 1], strides = [1, 1]} : vector<8x10xf32> to vector<8x1xf32>
    %c0_75 = arith.constant 0 : index
    %c0_76 = arith.constant 0 : index
    %c0_77 = arith.constant 0 : index
    %99 = vector.load %arg4[%c0_75, %c0_76, %c0_77] : memref<8x10x128xf32, #tpu.memory_space<vmem>>, vector<8x1x128xf32>
    %100 = vector.shape_cast %99 : vector<8x1x128xf32> to vector<8x128xf32>
    %101 = vector.broadcast %98 : vector<8x1xf32> to vector<8x128xf32>
    %102 = arith.mulf %101, %100 : vector<8x128xf32>
    %103 = vector.extract_strided_slice %96 {offsets = [0, 1], sizes = [8, 1], strides = [1, 1]} : vector<8x10xf32> to vector<8x1xf32>
    %c0_78 = arith.constant 0 : index
    %c1_79 = arith.constant 1 : index
    %c0_80 = arith.constant 0 : index
    %104 = vector.load %arg4[%c0_78, %c1_79, %c0_80] : memref<8x10x128xf32, #tpu.memory_space<vmem>>, vector<8x1x128xf32>
    %105 = vector.shape_cast %104 : vector<8x1x128xf32> to vector<8x128xf32>
    %106 = vector.broadcast %103 : vector<8x1xf32> to vector<8x128xf32>
    %107 = arith.mulf %106, %105 : vector<8x128xf32>
    %108 = arith.addf %102, %107 : vector<8x128xf32>
    %109 = vector.extract_strided_slice %96 {offsets = [0, 2], sizes = [8, 1], strides = [1, 1]} : vector<8x10xf32> to vector<8x1xf32>
    %c0_81 = arith.constant 0 : index
    %c2_82 = arith.constant 2 : index
    %c0_83 = arith.constant 0 : index
    %110 = vector.load %arg4[%c0_81, %c2_82, %c0_83] : memref<8x10x128xf32, #tpu.memory_space<vmem>>, vector<8x1x128xf32>
    %111 = vector.shape_cast %110 : vector<8x1x128xf32> to vector<8x128xf32>
    %112 = vector.broadcast %109 : vector<8x1xf32> to vector<8x128xf32>
    %113 = arith.mulf %112, %111 : vector<8x128xf32>
    %114 = arith.addf %108, %113 : vector<8x128xf32>
    %115 = vector.extract_strided_slice %96 {offsets = [0, 3], sizes = [8, 1], strides = [1, 1]} : vector<8x10xf32> to vector<8x1xf32>
    %c0_84 = arith.constant 0 : index
    %c3_85 = arith.constant 3 : index
    %c0_86 = arith.constant 0 : index
    %116 = vector.load %arg4[%c0_84, %c3_85, %c0_86] : memref<8x10x128xf32, #tpu.memory_space<vmem>>, vector<8x1x128xf32>
    %117 = vector.shape_cast %116 : vector<8x1x128xf32> to vector<8x128xf32>
    %118 = vector.broadcast %115 : vector<8x1xf32> to vector<8x128xf32>
    %119 = arith.mulf %118, %117 : vector<8x128xf32>
    %120 = arith.addf %114, %119 : vector<8x128xf32>
    %121 = vector.extract_strided_slice %96 {offsets = [0, 4], sizes = [8, 1], strides = [1, 1]} : vector<8x10xf32> to vector<8x1xf32>
    %c0_87 = arith.constant 0 : index
    %c4_88 = arith.constant 4 : index
    %c0_89 = arith.constant 0 : index
    %122 = vector.load %arg4[%c0_87, %c4_88, %c0_89] : memref<8x10x128xf32, #tpu.memory_space<vmem>>, vector<8x1x128xf32>
    %123 = vector.shape_cast %122 : vector<8x1x128xf32> to vector<8x128xf32>
    %124 = vector.broadcast %121 : vector<8x1xf32> to vector<8x128xf32>
    %125 = arith.mulf %124, %123 : vector<8x128xf32>
    %126 = arith.addf %120, %125 : vector<8x128xf32>
    %127 = vector.extract_strided_slice %96 {offsets = [0, 5], sizes = [8, 1], strides = [1, 1]} : vector<8x10xf32> to vector<8x1xf32>
    %c0_90 = arith.constant 0 : index
    %c5_91 = arith.constant 5 : index
    %c0_92 = arith.constant 0 : index
    %128 = vector.load %arg4[%c0_90, %c5_91, %c0_92] : memref<8x10x128xf32, #tpu.memory_space<vmem>>, vector<8x1x128xf32>
    %129 = vector.shape_cast %128 : vector<8x1x128xf32> to vector<8x128xf32>
    %130 = vector.broadcast %127 : vector<8x1xf32> to vector<8x128xf32>
    %131 = arith.mulf %130, %129 : vector<8x128xf32>
    %132 = arith.addf %126, %131 : vector<8x128xf32>
    %133 = vector.extract_strided_slice %96 {offsets = [0, 6], sizes = [8, 1], strides = [1, 1]} : vector<8x10xf32> to vector<8x1xf32>
    %c0_93 = arith.constant 0 : index
    %c6_94 = arith.constant 6 : index
    %c0_95 = arith.constant 0 : index
    %134 = vector.load %arg4[%c0_93, %c6_94, %c0_95] : memref<8x10x128xf32, #tpu.memory_space<vmem>>, vector<8x1x128xf32>
    %135 = vector.shape_cast %134 : vector<8x1x128xf32> to vector<8x128xf32>
    %136 = vector.broadcast %133 : vector<8x1xf32> to vector<8x128xf32>
    %137 = arith.mulf %136, %135 : vector<8x128xf32>
    %138 = arith.addf %132, %137 : vector<8x128xf32>
    %139 = vector.extract_strided_slice %96 {offsets = [0, 7], sizes = [8, 1], strides = [1, 1]} : vector<8x10xf32> to vector<8x1xf32>
    %c0_96 = arith.constant 0 : index
    %c7_97 = arith.constant 7 : index
    %c0_98 = arith.constant 0 : index
    %140 = vector.load %arg4[%c0_96, %c7_97, %c0_98] : memref<8x10x128xf32, #tpu.memory_space<vmem>>, vector<8x1x128xf32>
    %141 = vector.shape_cast %140 : vector<8x1x128xf32> to vector<8x128xf32>
    %142 = vector.broadcast %139 : vector<8x1xf32> to vector<8x128xf32>
    %143 = arith.mulf %142, %141 : vector<8x128xf32>
    %144 = arith.addf %138, %143 : vector<8x128xf32>
    %145 = vector.extract_strided_slice %96 {offsets = [0, 8], sizes = [8, 1], strides = [1, 1]} : vector<8x10xf32> to vector<8x1xf32>
    %c0_99 = arith.constant 0 : index
    %c8 = arith.constant 8 : index
    %c0_100 = arith.constant 0 : index
    %146 = vector.load %arg4[%c0_99, %c8, %c0_100] : memref<8x10x128xf32, #tpu.memory_space<vmem>>, vector<8x1x128xf32>
    %147 = vector.shape_cast %146 : vector<8x1x128xf32> to vector<8x128xf32>
    %148 = vector.broadcast %145 : vector<8x1xf32> to vector<8x128xf32>
    %149 = arith.mulf %148, %147 : vector<8x128xf32>
    %150 = arith.addf %144, %149 : vector<8x128xf32>
    %151 = vector.extract_strided_slice %96 {offsets = [0, 9], sizes = [8, 1], strides = [1, 1]} : vector<8x10xf32> to vector<8x1xf32>
    %c0_101 = arith.constant 0 : index
    %c9 = arith.constant 9 : index
    %c0_102 = arith.constant 0 : index
    %152 = vector.load %arg4[%c0_101, %c9, %c0_102] : memref<8x10x128xf32, #tpu.memory_space<vmem>>, vector<8x1x128xf32>
    %153 = vector.shape_cast %152 : vector<8x1x128xf32> to vector<8x128xf32>
    %154 = vector.broadcast %151 : vector<8x1xf32> to vector<8x128xf32>
    %155 = arith.mulf %154, %153 : vector<8x128xf32>
    %156 = arith.addf %150, %155 : vector<8x128xf32>
    %c0_103 = arith.constant 0 : index
    %c0_104 = arith.constant 0 : index
    %157 = vector.load %arg7[%c0_103, %c0_104] : memref<256x128xf32, #tpu.memory_space<vmem>>, vector<128x128xf32>
    %cst_105 = arith.constant dense<0.000000e+00> : vector<8x128xf32>
    %158 = tpu.matmul %80, %157, %cst_105 {dimension_numbers = #tpu.dot_dimension_numbers<[1], [0], [0], [1], [0, 0, 1, 1], [], []>} : vector<8x128xf32>, vector<128x128xf32>, vector<8x128xf32> -> vector<8x128xf32>
    %c128_106 = arith.constant 128 : index
    %c0_107 = arith.constant 0 : index
    %159 = vector.load %arg7[%c128_106, %c0_107] : memref<256x128xf32, #tpu.memory_space<vmem>>, vector<128x128xf32>
    %cst_108 = arith.constant dense<0.000000e+00> : vector<8x128xf32>
    %160 = tpu.matmul %156, %159, %cst_108 {dimension_numbers = #tpu.dot_dimension_numbers<[1], [0], [0], [1], [0, 0, 1, 1], [], []>} : vector<8x128xf32>, vector<128x128xf32>, vector<8x128xf32> -> vector<8x128xf32>
    %161 = arith.addf %158, %160 : vector<8x128xf32>
    %c0_109 = arith.constant 0 : index
    %c0_110 = arith.constant 0 : index
    %162 = vector.load %arg8[%c0_109, %c0_110] : memref<1x128xf32, #tpu.memory_space<vmem>>, vector<1x128xf32>
    %163 = vector.broadcast %162 : vector<1x128xf32> to vector<8x128xf32>
    %164 = arith.addf %161, %163 : vector<8x128xf32>
    %cst_111 = arith.constant 0.000000e+00 : f32
    %165 = vector.broadcast %cst_111 : f32 to vector<8x128xf32>
    %166 = arith.maximumf %164, %165 : vector<8x128xf32>
    %c0_112 = arith.constant 0 : index
    %c0_113 = arith.constant 0 : index
    %167 = vector.load %arg9[%c0_112, %c0_113] : memref<128x384xf32, #tpu.memory_space<vmem>>, vector<128x384xf32>
    %cst_114 = arith.constant dense<0.000000e+00> : vector<8x384xf32>
    %168 = tpu.matmul %166, %167, %cst_114 {dimension_numbers = #tpu.dot_dimension_numbers<[1], [0], [0], [1], [0, 0, 1, 1], [], []>} : vector<8x128xf32>, vector<128x384xf32>, vector<8x384xf32> -> vector<8x384xf32>
    %c0_115 = arith.constant 0 : index
    %c0_116 = arith.constant 0 : index
    %169 = vector.load %arg11[%c0_115, %c0_116] : memref<1x384xf32, #tpu.memory_space<vmem>>, vector<1x384xf32>
    %170 = vector.broadcast %169 : vector<1x384xf32> to vector<8x384xf32>
    %171 = arith.addf %168, %170 : vector<8x384xf32>
    %172 = vector.extract_strided_slice %171 {offsets = [0, 0], sizes = [8, 128], strides = [1, 1]} : vector<8x384xf32> to vector<8x128xf32>
    %173 = vector.extract_strided_slice %47 {offsets = [0, 0], sizes = [8, 128], strides = [1, 1]} : vector<8x384xf32> to vector<8x128xf32>
    %174 = arith.addf %172, %173 : vector<8x128xf32>
    %175 = arith.negf %174 : vector<8x128xf32>
    %176 = math.exp %175 : vector<8x128xf32>
    %cst_117 = arith.constant 1.000000e+00 : f32
    %177 = vector.broadcast %cst_117 : f32 to vector<8x128xf32>
    %178 = arith.addf %177, %176 : vector<8x128xf32>
    %179 = arith.divf %177, %178 : vector<8x128xf32>
    %180 = vector.extract_strided_slice %171 {offsets = [0, 128], sizes = [8, 128], strides = [1, 1]} : vector<8x384xf32> to vector<8x128xf32>
    %181 = vector.extract_strided_slice %47 {offsets = [0, 128], sizes = [8, 128], strides = [1, 1]} : vector<8x384xf32> to vector<8x128xf32>
    %182 = arith.addf %180, %181 : vector<8x128xf32>
    %183 = arith.negf %182 : vector<8x128xf32>
    %184 = math.exp %183 : vector<8x128xf32>
    %cst_118 = arith.constant 1.000000e+00 : f32
    %185 = vector.broadcast %cst_118 : f32 to vector<8x128xf32>
    %186 = arith.addf %185, %184 : vector<8x128xf32>
    %187 = arith.divf %185, %186 : vector<8x128xf32>
    %188 = vector.extract_strided_slice %171 {offsets = [0, 256], sizes = [8, 128], strides = [1, 1]} : vector<8x384xf32> to vector<8x128xf32>
    %189 = vector.extract_strided_slice %47 {offsets = [0, 256], sizes = [8, 128], strides = [1, 1]} : vector<8x384xf32> to vector<8x128xf32>
    %190 = arith.mulf %179, %189 : vector<8x128xf32>
    %191 = arith.addf %188, %190 : vector<8x128xf32>
    %192 = math.tanh %191 : vector<8x128xf32>
    %cst_119 = arith.constant 1.000000e+00 : f32
    %193 = vector.broadcast %cst_119 : f32 to vector<8x128xf32>
    %194 = arith.subf %193, %187 : vector<8x128xf32>
    %195 = arith.mulf %194, %192 : vector<8x128xf32>
    %196 = arith.mulf %187, %40 : vector<8x128xf32>
    %197 = arith.addf %195, %196 : vector<8x128xf32>
    %c0_120 = arith.constant 0 : index
    %c0_121 = arith.constant 0 : index
    %198 = vector.load %arg13[%c0_120, %c0_121] : memref<8x128xf32, #tpu.memory_space<vmem>>, vector<8x128xf32>
    tpu.vector_store %arg13[%c0_120, %c0_121], %197 {strides = array<i32>} : memref<8x128xf32, #tpu.memory_space<vmem>>, vector<8x128xf32>,
    return
  }
  func.func @transform_1(%arg0: i32, %arg1: memref<8xi32, #tpu.memory_space<smem>>) -> (i32, i32) {
    %c0_i32 = arith.constant 0 : i32
    %c0_i32_0 = arith.constant 0 : i32
    %c0_i32_1 = arith.constant 0 : i32
    return %c0_i32, %c0_i32_0 : i32, i32
  }
  func.func @transform_2(%arg0: i32, %arg1: memref<8xi32, #tpu.memory_space<smem>>) -> (i32, i32, i32) {
    %c0_i32 = arith.constant 0 : i32
    %c0_i32_0 = arith.constant 0 : i32
    %c0_i32_1 = arith.constant 0 : i32
    %c0_i32_2 = arith.constant 0 : i32
    return %c0_i32, %c0_i32_0, %c0_i32_1 : i32, i32, i32
  }
  func.func @transform_3(%arg0: i32, %arg1: memref<8xi32, #tpu.memory_space<smem>>) -> (i32, i32) {
    %c0_i32 = arith.constant 0 : i32
    %c0_i32_0 = arith.constant 0 : i32
    %c0_i32_1 = arith.constant 0 : i32
    return %c0_i32, %c0_i32_0 : i32, i32
  }
  func.func @transform_4(%arg0: i32, %arg1: memref<8xi32, #tpu.memory_space<smem>>) -> (i32, i32) {
    %c0_i32 = arith.constant 0 : i32
    %c0_i32_0 = arith.constant 0 : i32
    %c0_i32_1 = arith.constant 0 : i32
    return %c0_i32, %c0_i32_0 : i32, i32
  }
  func.func @transform_5(%arg0: i32, %arg1: memref<8xi32, #tpu.memory_space<smem>>) -> (i32, i32) {
    %c0_i32 = arith.constant 0 : i32
    %c0_i32_0 = arith.constant 0 : i32
    %c0_i32_1 = arith.constant 0 : i32
    return %c0_i32, %c0_i32_0 : i32, i32
  }
  func.func @transform_6(%arg0: i32, %arg1: memref<8xi32, #tpu.memory_space<smem>>) -> (i32, i32) {
    %c0_i32 = arith.constant 0 : i32
    %c0_i32_0 = arith.constant 0 : i32
    %c0_i32_1 = arith.constant 0 : i32
    return %c0_i32, %c0_i32_0 : i32, i32
  }
  func.func @transform_7(%arg0: i32, %arg1: memref<8xi32, #tpu.memory_space<smem>>) -> (i32, i32) {
    %c0_i32 = arith.constant 0 : i32
    %c0_i32_0 = arith.constant 0 : i32
    %c0_i32_1 = arith.constant 0 : i32
    return %c0_i32, %c0_i32_0 : i32, i32
  }
  func.func @transform_8(%arg0: i32, %arg1: memref<8xi32, #tpu.memory_space<smem>>) -> (i32, i32) {
    %c0_i32 = arith.constant 0 : i32
    %c0_i32_0 = arith.constant 0 : i32
    %c0_i32_1 = arith.constant 0 : i32
    return %c0_i32, %c0_i32_0 : i32, i32
  }
  func.func @transform_9(%arg0: i32, %arg1: memref<8xi32, #tpu.memory_space<smem>>) -> (i32, i32) {
    %c0_i32 = arith.constant 0 : i32
    %c0_i32_0 = arith.constant 0 : i32
    %c0_i32_1 = arith.constant 0 : i32
    return %c0_i32, %c0_i32_0 : i32, i32
  }
  func.func @transform_10(%arg0: i32, %arg1: memref<8xi32, #tpu.memory_space<smem>>) -> (i32, i32) {
    %c0_i32 = arith.constant 0 : i32
    %c0_i32_0 = arith.constant 0 : i32
    %c0_i32_1 = arith.constant 0 : i32
    return %c0_i32, %c0_i32_0 : i32, i32
  }
  func.func @transform_11(%arg0: i32, %arg1: memref<8xi32, #tpu.memory_space<smem>>) -> (i32, i32) {
    %c0_i32 = arith.constant 0 : i32
    %c0_i32_0 = arith.constant 0 : i32
    %c0_i32_1 = arith.constant 0 : i32
    return %c0_i32, %c0_i32_0 : i32, i32
  }
  func.func @transform_12(%arg0: i32, %arg1: memref<8xi32, #tpu.memory_space<smem>>) -> (i32, i32) {
    %c0_i32 = arith.constant 0 : i32
    %c0_i32_0 = arith.constant 0 : i32
    %c0_i32_1 = arith.constant 0 : i32
    return %c0_i32, %c0_i32_0 : i32, i32
  }
}

</mosaic_0001>

<bundles_post_ra>
// kernel: tpu_custom_call.1
= control target key start
LH: loop header
LB: loop body
LE: loop exit
PB: predicated region body
PF: predicated region fallthrough
CT: control target
= control target key end

     0   :  { %s3454_s0 = inlined_call_operand.vmem [shape: s32[8], index: 0, kind: input, shape index: {}]   ;;  %s3455_s1 = inlined_call_operand.hbm [shape: f32[2048,128], index: 1, kind: input, shape index: {}]   ;;  %s3456_s2 = inlined_call_operand.vmem [shape: f32[8,128], index: 2, kind: input, shape index: {}]   ;;  %s3457_s3 = inlined_call_operand.vmem [shape: f32[8,10,128], index: 3, kind: input, shape index: {}]   ;;  %s3458_s4 = inlined_call_operand.vmem [shape: f32[256,10], index: 4, kind: input, shape index: {}]   ;;  %s3459_s5 = inlined_call_operand.vmem [shape: f32[1,10], index: 5, kind: input, shape index: {}]   ;;  %s3460_s6 = inlined_call_operand.hbm [shape: f32[256,128], index: 6, kind: input, shape index: {}]   ;;  %s3461_s7 = inlined_call_operand.vmem [shape: f32[1,128], index: 7, kind: input, shape index: {}]   ;;  %s3462_s8 = inlined_call_operand.vmem [shape: f32[128,384], index: 8, kind: input, shape index: {}]   ;;  %s3463_s9 = inlined_call_operand.hbm [shape: f32[128,384], index: 9, kind: input, shape index: {}]   ;;  %s3464_s10 = inlined_call_operand.vmem [shape: f32[1,384], index: 10, kind: input, shape index: {}]   ;;  %s3465_s11 = inlined_call_operand.vmem [shape: f32[1,384], index: 11, kind: input, shape index: {}]   ;;  %s3466_s12 = inlined_call_operand.hbm [shape: f32[8,128], index: 12, kind: output, shape index: {0}]   ;;  %s3467_s13 = inlined_call_operand.hbm [shape: f32[8,10], index: 13, kind: output, shape index: {1}]  }
   0x1   :  { %s19_s27 = sshll.u32 %s3454_s0, 4  ;;  %s20_s27 = int_to_ptr.vmem [resolvable:$true] %s19_s27 }
   0x2   :  { %s2114_s28 = scalar_lea.vmem %s20_s27, 16  ;;  %p2119_p1 = scmp.lt.s32.totalorder %s20_s27, %s20_s27 }
   0x3   :  { %p2115_p0 = scmp.ne.s32.totalorder %s20_s27, %s2114_s28  ;;  %p2120_p2 = scmp.lt.s32.totalorder %s2114_s28, %s2114_s28 }
   0x5   :  { %p2121_p3 = por %p2120_p2, %p2119_p1 }
   0x7   :  { %p2122_p4 = pnand %p2121_p3, %p2115_p0 }
   0x9   :  { %2125 = shalt.err (!%p2122_p4)  }
   0xa   :  { %s2432_s29 = smov [#allocation5]  }
   0xb   :  { %22 = dma.vmem_to_smem %s20_s27, 16, %s2432_s29, [#allocation4] }
   0xc   :  { %2406 = dma.done.wait [#allocation4], 16 }
   0xd   :  { %2407 = vsyncadd [#allocation4], 4294967280 }
   0xe   :  { %24 = sfence }
   0xf   :  { %25 = vsyncpa [#allocation7], 0 }
  0x10   :  { %26 = vsyncpa [#allocation10], 0 }
  0x11   :  { %27 = vsyncpa [#allocation8], 0 }
  0x12   :  { %28 = vsyncpa [#allocation13], 0  ;;  %s2433_s30 = smov [#allocation6]   ;;  %s2126_s16 = scalar_lea.hbm %s3460_s6, 4096 }
  0x13   :  { %s42_s14 = sshll.u32 %s2433_s30, 4  ;;  %p2127_p5 = scmp.ne.s32.totalorder %s3460_s6, %s2126_s16  ;;  %s43_s14 = int_to_ptr.vmem [resolvable:$true] %s42_s14 }
  0x14   :  { %p2130_p6 = scmp.lt.u32.totalorder %s2126_s16, %s3460_s6 }
  0x16   :  { %p2132_p7 = pnand %p2130_p6, %p2127_p5 }
  0x18   :  { %2135 = shalt.err (!%p2132_p7)
}
  0x19   :  { %s2136_s21 = scalar_lea.vmem %s43_s14, 4096  ;;  %p2141_p9 = scmp.lt.s32.totalorder %s43_s14, %s43_s14 }
  0x1a   :  { %p2137_p8 = scmp.ne.s32.totalorder %s43_s14, %s2136_s21  ;;  %p2142_p10 = scmp.lt.s32.totalorder %s2136_s21, %s2136_s21 }
  0x1c   :  { %p2143_p11 = por %p2142_p10, %p2141_p9 }
  0x1e   :  { %p2144_p12 = pnand %p2143_p11, %p2137_p8 }
  0x20   :  { %2147 = shalt.err (!%p2144_p12)
}
  0x21   :  { %s2434_s22 = smov 128   ;;  %s2435_s23 = smov 8  }
  0x22   :  { %48 = dma.hbm_to_vmem [thread:$0]  %s3460_s6, 4096, %s43_s14, [#allocation7], %s2434_s22, %s2434_s22, %s2435_s23  }
  0x23   :  { %s2436_s26 = smov [#allocation9]   ;;  %s2148_s30 = scalar_lea.hbm %s3463_s9, 6144 }
  0x24   :  { %s58_s27 = sshll.u32 %s2436_s26, 4  ;;  %p2149_p13 = scmp.ne.s32.totalorder %s3463_s9, %s2148_s30  ;;  %s59_s27 = int_to_ptr.vmem [resolvable:$true] %s58_s27 }
  0x25   :  { %p2152_p0 = scmp.lt.u32.totalorder %s2148_s30, %s3463_s9 }
  0x27   :  { %p2154_p1 = pnand %p2152_p0, %p2149_p13 }
  0x29   :  { %2157 = shalt.err (!%p2154_p1)
}
  0x2a   :  { %s2158_s18 = scalar_lea.vmem %s59_s27, 6144  ;;  %p2163_p3 = scmp.lt.s32.totalorder %s59_s27, %s59_s27 }
  0x2b   :  { %p2159_p2 = scmp.ne.s32.totalorder %s59_s27, %s2158_s18  ;;  %p2164_p4 = scmp.lt.s32.totalorder %s2158_s18, %s2158_s18 }
  0x2d   :  { %p2165_p5 = por %p2164_p4, %p2163_p3 }
  0x2f   :  { %p2166_p6 = pnand %p2165_p5, %p2159_p2 }
  0x31   :  { %2169 = shalt.err (!%p2166_p6)
}
  0x32   :  { %s2437_s6 = smov 384   ;;  %s2438_s14 = smov 24  }
  0x33   :  { %64 = dma.hbm_to_vmem [thread:$0]  %s3463_s9, 6144, %s59_s27, [#allocation10], %s2437_s6, %s2437_s6, %s2438_s14  }
  0x34   :  { %2408 = dma.done.wait [#allocation7], 4096  }
  0x35   :  { %2409 = vsyncadd [#allocation7], 4294963200 }
  0x36   :  { %2410 = dma.done.wait [#allocation10], 6144  }
  0x37   :  { %2411 = vsyncadd [#allocation10], 4294961152  ;;  %v2439_v0 = vmov 0.0|0.0   ;;  %vm2440_vm0 = vmmov 0   ;;  %v2441_v1 = vmov 0.0   ;;  %v202_v2 = vld [vmem:[%s3458_s4 + $0x80] sm:$0xff]  ;;  %v338_v60 = vlaneseq }
  0x38   :  { %1845 = vmatprep.subr.bf16.mxu0 %v2439_v0  ;;  %1667 = vmatprep.mubr.msk.f32.mxu0 %vm2440_vm0, %v2441_v1  ;;  %v203_v3 = vld [vmem:[%s3458_s4 + $0x88] sm:$0xff]  ;;  %v204_v4 = vld [vmem:[%s3458_s4 + $0x90] sm:$0xff]  ;;  %v205_v6 = vld [vmem:[%s3458_s4 + $0x98] sm:$0xff]  ;;  %s2442_s17 = smov [#allocation2]   ;;  %s2637_s6 = sld [smem:[#allocation5 + $0x1]] }
  0x39   :  { %417 = vmatprep.mubr.f32.mxu1 %v2441_v1  ;;  %v1846_v5 = vpack.c.bf16 %v203_v3, %v202_v2  ;;  %v1849_v7 = vpack.c.bf16 %v205_v6, %v204_v4  ;;  %v206_v8 = vld [vmem:[%s3458_s4 + $0xa0] sm:$0xff]  ;;  %v207_v9 = vld [vmem:[%s3458_s4 + $0xa8] sm:$0xff]  ;;  %v208_v11 = vld [vmem:[%s3458_s4 + $0xb0] sm:$0xff]  ;;  %s85_s18 = sshll.u32 %s2442_s17, 4  ;;  %s2443_s14 = smov [#allocation2 + $0x1]   ;;  %s2639_s18 = int_to_ptr.vmem [resolvable:$true] %s85_s18 }
  0x3a   :  { %v1852_v10 = vpack.c.bf16 %v207_v9, %v206_v8  ;;  %v209_v12 = vld [vmem:[%s3458_s4 + $0xb8] sm:$0xff]  ;;  %v210_v14 = vld [vmem:[%s3458_s4 + $0xc0] sm:$0xff]  ;;  %v211_v15 = vld [vmem:[%s3458_s4 + $0xc8] sm:$0xff]  ;;  %s101_s19 = sshll.u32 %s2443_s14, 4  ;;  %s2641_s20 = sld [smem:[#allocation5 + $0x2]]  ;;  %v2645_v9 = vshrl.u32 %v338_v60, 7  ;;  %s2643_s19 = int_to_ptr.vmem [resolvable:$true] %s101_s19 }
  0x3b   :  { %1847 = vmatpush3.bf16.msra.mxu0 %v1846_v5  ;;  %v1855_v13 = vpack.c.bf16 %v209_v12, %v208_v11  ;;  %v1858_v16 = vpack.c.bf16 %v211_v15, %v210_v14  ;;  %v212_v17 = vld [vmem:[%s3458_s4 + $0xd0] sm:$0xff]  ;;  %v213_v18 = vld [vmem:[%s3458_s4 + $0xd8] sm:$0xff]  ;;  %v214_v20 = vld [vmem:[%s3458_s4 + $0xe0] sm:$0xff]  ;;  %s2444_s21 = smov [#allocation2 + $0x2]   ;;  %s2647_s23 = sld [smem:[#allocation5 + $0x3]] }
  0x3c   :  { %1848 = vmatprep.subr.bf16.mxu0 %v2439_v0  ;;  %v1861_v19 = vpack.c.bf16 %v213_v18, %v212_v17  ;;  %v215_v21 = vld [vmem:[%s3458_s4 + $0xe8] sm:$0xff]  ;;  %v216_v23 = vld [vmem:[%s3458_s4 + $0xf0] sm:$0xff]  ;;  %v217_v24 = vld [vmem:[%s3458_s4 + $0xf8] sm:$0xff]  ;;  %s117_s22 = sshll.u32 %s2444_s21, 4  ;;  %v340_v14 = vsub.s32 0, %v2645_v9  ;;  %v344_v15 = vsub.s32 1, %v2645_v9  ;;  %s2654_s22 = int_to_ptr.vmem [resolvable:$true] %s117_s22 }
  0x3d   :  { %v1864_v22 = vpack.c.bf16 %v215_v21, %v214_v20  ;;  %v1867_v25 = vpack.c.bf16 %v217_v24, %v216_v23  ;;  %v290_v26 = vld [vmem:[#allocation9 + $0x10] sm:$0xff]  ;;  %v293_v27 = vld [vmem:[#allocation9 + $0x28] sm:$0xff]  ;;  %v2621_v28 = vld [vmem:[%s3456_s2] sm:$0xff]  ;;  %s2635_s2 = sld [smem:[#allocation5]]  ;;  %s2669_s0 = scalar_lea.hbm %s3455_s1, 32768 }
  0x3e   :  { %v1902_v29 = vpack.c.bf16 %v293_v27, %v290_v26  ;;  %v296_v30 = vld [vmem:[#allocation9 + $0x40] sm:$0xff]  ;;  %v299_v31 = vld [vmem:[#allocation9 + $0x58] sm:$0xff]  ;;  %v302_v33 = vld [vmem:[#allocation9 + $0x70] sm:$0xff]  ;;  %s1508_s27 = sshll.u32 %s2637_s6, 4 }
  0x3f   :  { %1850 = vmatpush3.bf16.msra.mxu0 %v1849_v7  ;;  %v1905_v32 = vpack.c.bf16 %v299_v31, %v296_v30  ;;  %v305_v34 = vld [vmem:[#allocation9 + $0x88] sm:$0xff]  ;;  %v308_v36 = vld [vmem:[#allocation9 + $0xa0] sm:$0xff]  ;;  %v311_v37 = vld [vmem:[#allocation9 + $0xb8] sm:$0xff] }
  0x40   :  { %1851 = vmatprep.subr.bf16.mxu0 %v2439_v0  ;;  %v1908_v35 = vpack.c.bf16 %v305_v34, %v302_v33  ;;  %v1911_v38 = vpack.c.bf16 %v311_v37, %v308_v36  ;;  %v314_v39 = vld [vmem:[#allocation9 + $0xd0] sm:$0xff]  ;;  %v317_v40 = vld [vmem:[#allocation9 + $0xe8] sm:$0xff]  ;;  %v320_v42 = vld [vmem:[#allocation9 + $0x100] sm:$0xff] }
  0x41   :  { %v1914_v41 = vpack.c.bf16 %v317_v40, %v314_v39  ;;  %v323_v43 = vld [vmem:[#allocation9 + $0x118] sm:$0xff]  ;;  %v326_v45 = vld [vmem:[#allocation9 + $0x130] sm:$0xff]  ;;  %v329_v46 = vld [vmem:[#allocation9 + $0x148] sm:$0xff] }
  0x42   :  { %v1917_v44 = vpack.c.bf16 %v323_v43, %v320_v42  ;;  %v1920_v47 = vpack.c.bf16 %v329_v46, %v326_v45  ;;  %v332_v48 = vld [vmem:[#allocation9 + $0x160] sm:$0xff]  ;;  %v335_v49 = vld [vmem:[#allocation9 + $0x178] sm:$0xff]  ;;  %v289_v51 = vld [vmem:[#allocation9 + $0x8] sm:$0xff] }
  0x43   :  { %1853 = vmatpush3.bf16.msra.mxu0 %v1852_v10  ;;  %v1923_v50 = vpack.c.bf16 %v335_v49, %v332_v48  ;;  %v292_v52 = vld [vmem:[#allocation9 + $0x20] sm:$0xff]  ;;  %v291_v55 = vld [vmem:[#allocation9 + $0x18] sm:$0xff]  ;;  %v298_v58 = vld [vmem:[#allocation9 + $0x50] sm:$0xff]  ;;  %s1506_s9 = sshll.u32 %s2635_s2, 4 }
  0x44   :  { %1854 = vmatprep.subr.bf16.mxu0 %v2439_v0  ;;  %v1869_v53 = vpack.c.bf16 %v292_v52, %v289_v51  ;;  %v288_v54 = vld [vmem:[#allocation9] sm:$0xff]  ;;  %v295_v57 = vld [vmem:[#allocation9 + $0x38] sm:$0xff]  ;;  %v294_v59 = vld [vmem:[#allocation9 + $0x30] sm:$0xff]  ;;  %s77_s26 = scalar_lea.hbm %s3455_s1, %s1506_s9 }
  0x45   :  { %v1871_v56 = vpack.c.bf16 %v291_v55, %v288_v54  ;;  %v1873_v61 = vpack.c.bf16 %v298_v58, %v295_v57  ;;  %v297_v62 = vld [vmem:[#allocation9 + $0x48] sm:$0xff]  ;;  %v304_v2 = vld [vmem:[#allocation9 + $0x80] sm:$0xff]  ;;  %v303_v6 = vld [vmem:[#allocation9 + $0x78] sm:$0xff]  ;;  %s2170_s28 = scalar_lea.hbm %s77_s26, 16  ;;  %p2173_p8 = scmp.lt.u32.totalorder %s77_s26, %s3455_s1 }
  0x46   :  { %1870 = vmatprep.subr.bf16.mxu1 %v1869_v53  ;;  %v301_v63 = vld [vmem:[#allocation9 + $0x68] sm:$0xff]  ;;  %v1875_v3 = vpack.c.bf16 %v297_v62, %v294_v59  ;;  %v300_v5 = vld [vmem:[#allocation9 + $0x60] sm:$0xff]  ;;  %v307_v7 = vld [vmem:[#allocation9 + $0x98] sm:$0xff]  ;;  %p2171_p7 = scmp.ne.s32.totalorder %s77_s26, %s2170_s28  ;;  %p2174_p9 = scmp.lt.u32.totalorder %s2669_s0, %s2170_s28 }
  0x47   :  { %1856 = vmatpush3.bf16.msra.mxu0 %v1855_v13  ;;  %1872 = vmatpush1.bf16.msra.mxu1 %v1871_v56  ;;  %v1877_v4 = vpack.c.bf16 %v304_v2, %v301_v63  ;;  %v310_v8 = vld [vmem:[#allocation9 + $0xb0] sm:$0xff]  ;;  %v1879_v10 = vpack.c.bf16 %v303_v6, %v300_v5  ;;  %v2651_v13 = vld [vmem:[#allocation9 + $0xa8] sm:$0xff]  ;;  %v2660_v17 = vld [vmem:[#allocation9 + $0xe0] sm:$0xff]  ;;  %p2176_p11 = scmp.lt.u32.totalorder %s2170_s28, %s77_s26 }
  0x48   :  { %1857 = vmatprep.subr.bf16.mxu0 %v2439_v0  ;;  %1874 = vmatprep.subr.bf16.mxu1 %v1873_v61  ;;  %v1881_v11 = vpack.c.bf16 %v310_v8, %v307_v7  ;;  %v2649_v12 = vld [vmem:[#allocation9 + $0x90] sm:$0xff]  ;;  %p2175_p10 = por %p2174_p9, %p2173_p8 }
  0x4a   :  { %p2177_p12 = por %p2176_p11, %p2175_p10 }
  0x4b   :  { %1859 = vmatpush3.bf16.msra.mxu0 %v1858_v16  ;;  %1876 = vmatpush1.bf16.msra.mxu1 %v1875_v3  ;;  %v2658_v16 = vld [vmem:[#allocation9 + $0xc8] sm:$0xff] }
  0x4c   :  { %1860 = vmatprep.subr.bf16.mxu0 %v2439_v0  ;;  %1878 = vmatprep.subr.bf16.mxu1 %v1877_v4  ;;  %p2178_p13 = pnand %p2177_p12, %p2171_p7 }
  0x4f   :  { %1862 = vmatpush3.bf16.msra.mxu0 %v1861_v19 }
  0x50   :  { %1863 = vmatprep.subr.bf16.mxu0 %v2439_v0 }
  0x53   :  { %1865 = vmatpush3.bf16.msra.mxu0 %v1864_v22 }
  0x54   :  { %1866 = vmatprep.subr.bf16.mxu0 %v2439_v0 }
  0x57   :  { %1868 = vmatpush3.bf16.msra.mxu0 %v1867_v25 }
  0x58   :  { %1901 = vmatprep.subr.bf16.mxu0 %v2439_v0 }
  0x5a   :  { %1668 = vmatmul.mubr.f32.vlgmr.msra.gmra.mrb[0].mxu0 %v2621_v28 }
  0x5b   :  { %1903 = vmatpush3.bf16.msra.mxu0 %v1902_v29  ;;  %1702 = vmatprep.mubr.msk.f32.mxu0 %vm2440_vm0, %v2441_v1 }
  0x5c   :  { %1904 = vmatprep.subr.bf16.mxu0 %v2439_v0 }
  0x5f   :  { %1906 = vmatpush3.bf16.msra.mxu0 %v1905_v32 }
  0x60   :  { %1907 = vmatprep.subr.bf16.mxu0 %v2439_v0 }
  0x63   :  { %1909 = vmatpush3.bf16.msra.mxu0 %v1908_v35 }
  0x64   :  { %1910 = vmatprep.subr.bf16.mxu0 %v2439_v0 }
  0x67   :  { %1912 = vmatpush3.bf16.msra.mxu0 %v1911_v38 }
  0x68   :  { %1913 = vmatprep.subr.bf16.mxu0 %v2439_v0 }
  0x6b   :  { %1915 = vmatpush3.bf16.msra.mxu0 %v1914_v41 }
  0x6c   :  { %1916 = vmatprep.subr.bf16.mxu0 %v2439_v0 }
  0x6f   :  { %1918 = vmatpush3.bf16.msra.mxu0 %v1917_v44 }
  0x70   :  { %1919 = vmatprep.subr.bf16.mxu0 %v2439_v0 }
  0x73   :  { %1921 = vmatpush3.bf16.msra.mxu0 %v1920_v47 }
  0x74   :  { %1922 = vmatprep.subr.bf16.mxu0 %v2439_v0 }
  0x77   :  { %1924 = vmatpush3.bf16.msra.mxu0 %v1923_v50 }
  0x7a   :  { %1703 = vmatmul.mubr.f32.vlgmr.msra.gmra.mrb[2].mxu0 %v2621_v28 }
  0x7b   :  { %2181 = shalt.err (!%p2178_p13)  }
  0x7c   :  { %s2182_s2 = scalar_lea.vmem %s2639_s18, 16  ;;  %s2678_s17 = scalar_lea.vmem %s2639_s18, 128 }
  0x7d   :  { %p2183_p0 = scmp.ne.s32.totalorder %s2639_s18, %s2182_s2  ;;  %p2187_p1 = scmp.lt.s32.totalorder %s2639_s18, %s2639_s18 }
  0x7e   :  { %p2188_p2 = scmp.lt.s32.totalorder %s2678_s17, %s2182_s2 }
  0x80   :  { %p2189_p3 = por %p2188_p2, %p2187_p1 }
  0x82   :  { %p2190_p4 = pnand %p2189_p3, %p2183_p0 }
  0x84   :  { %2193 = shalt.err (!%p2190_p4)  }
  0x85   :  { %88 = dma.hbm_to_vmem [thread:$0]  %s77_s26, 16, %s2639_s18, [#allocation3]  ;;  %1880 = vmatpush1.bf16.msra.mxu1 %v1879_v10  ;;  %v1883_v18 = vpack.c.bf16 %v2651_v13, %v2649_v12  ;;  %v2693_v19 = vld [vmem:[%s3465_s11] sm:$0x7]  ;;  %v1885_v20 = vpack.c.bf16 %v2660_v17, %v2658_v16  ;;  %v2697_v21 = vld [vmem:[#allocation9 + $0xc0] sm:$0xff] }
  0x86   :  { %s91_s21 = scalar_lea.hbm %s3455_s1, %s1508_s27  ;;  %s1510_s9 = sshll.u32 %s2641_s20, 4  ;;  %1882 = vmatprep.subr.bf16.mxu1 %v1881_v11  ;;  %v2699_v22 = vld [vmem:[#allocation9 + $0xd8] sm:$0xff] }
  0x87   :  { %s2194_s26 = scalar_lea.hbm %s91_s21, 16  ;;  %p2197_p6 = scmp.lt.u32.totalorder %s91_s21, %s3455_s1 }
  0x88   :  { %p2195_p5 = scmp.ne.s32.totalorder %s91_s21, %s2194_s26  ;;  %p2198_p7 = scmp.lt.u32.totalorder %s2669_s0, %s2194_s26 }
  0x89   :  { %p2200_p9 = scmp.lt.u32.totalorder %s2194_s26, %s91_s21 }
  0x8a   :  { %p2199_p8 = por %p2198_p7, %p2197_p6 }
  0x8c   :  { %p2201_p10 = por %p2200_p9, %p2199_p8 }
  0x8e   :  { %p2202_p11 = pnand %p2201_p10, %p2195_p5 }
  0x90   :  { %2205 = shalt.err (!%p2202_p11)  }
  0x91   :  { %s2206_s11 = scalar_lea.vmem %s2643_s19, 16  ;;  %p2211_p13 = scmp.lt.s32.totalorder %s2643_s19, %s2639_s18 }
  0x92   :  { %p2207_p12 = scmp.ne.s32.totalorder %s2643_s19, %s2206_s11  ;;  %p2212_p0 = scmp.lt.s32.totalorder %s2678_s17, %s2206_s11 }
  0x94   :  { %p2213_p1 = por %p2212_p0, %p2211_p13 }
  0x96   :  { %p2214_p2 = pnand %p2213_p1, %p2207_p12 }
  0x98   :  { %2217 = shalt.err (!%p2214_p2)  }
  0x99   :  { %104 = dma.hbm_to_vmem [thread:$0]  %s91_s21, 16, %s2643_s19, [#allocation3 + $0x1]  ;;  %v2714_v23 = vrot.slane %v2693_v19, %v340_v14  ;;  %v2719_v24 = vrot.slane %v2693_v19, %v344_v15  ;;  %v319_v25 = vld [vmem:[#allocation9 + $0xf8] sm:$0xff]  ;;  %v322_v26 = vld [vmem:[#allocation9 + $0x110] sm:$0xff] }
  0x9a   :  { %s107_s30 = scalar_lea.hbm %s3455_s1, %s1510_s9  ;;  %s1512_s15 = sshll.u32 %s2647_s23, 4 }
  0x9b   :  { %s2218_s16 = scalar_lea.hbm %s107_s30, 16  ;;  %p2221_p4 = scmp.lt.u32.totalorder %s107_s30, %s3455_s1 }
  0x9c   :  { %p2219_p3 = scmp.ne.s32.totalorder %s107_s30, %s2218_s16  ;;  %p2222_p5 = scmp.lt.u32.totalorder %s2669_s0, %s2218_s16 }
  0x9d   :  { %p2224_p7 = scmp.lt.u32.totalorder %s2218_s16, %s107_s30 }
  0x9e   :  { %p2223_p6 = por %p2222_p5, %p2221_p4 }
  0xa0   :  { %p2225_p8 = por %p2224_p7, %p2223_p6 }
  0xa2   :  { %p2226_p9 = pnand %p2225_p8, %p2219_p3 }
  0xa4   :  { %2229 = shalt.err (!%p2226_p9)  }
  0xa5   :  { %s2230_s6 = scalar_lea.vmem %s2654_s22, 16  ;;  %p2235_p11 = scmp.lt.s32.totalorder %s2654_s22, %s2639_s18 }
  0xa6   :  { %p2231_p10 = scmp.ne.s32.totalorder %s2654_s22, %s2230_s6  ;;  %p2236_p12 = scmp.lt.s32.totalorder %s2678_s17, %s2230_s6 }
  0xa8   :  { %p2237_p13 = por %p2236_p12, %p2235_p11 }
  0xaa   :  { %p2238_p0 = pnand %p2237_p13, %p2231_p10 }
  0xac   :  { %2241 = shalt.err (!%p2238_p0)  }
  0xad   :  { %120 = dma.hbm_to_vmem [thread:$0]  %s107_s30, 16, %s2654_s22, [#allocation3 + $0x2]  ;;  %1884 = vmatpush1.bf16.msra.mxu1 %v1883_v18  ;;  %v1887_v27 = vpack.c.bf16 %v2699_v22, %v2697_v21  ;;  %v1889_v29 = vpack.c.bf16 %v322_v26, %v319_v25  ;;  %v318_v30 = vld [vmem:[#allocation9 + $0xf0] sm:$0xff]  ;;  %v321_v31 = vld [vmem:[#allocation9 + $0x108] sm:$0xff]  ;;  %v328_v33 = vld [vmem:[#allocation9 + $0x140] sm:$0xff] }
  0xae   :  { %s123_s21 = scalar_lea.hbm %s3455_s1, %s1512_s15  ;;  %1886 = vmatprep.subr.bf16.mxu1 %v1885_v20  ;;  %s2445_s9 = smov [#allocation2 + $0x3]   ;;  %v325_v32 = vld [vmem:[#allocation9 + $0x128] sm:$0xff] }
  0xaf   :  { %s133_s24 = sshll.u32 %s2445_s9, 4  ;;  %s2740_s25 = sld [smem:[#allocation5 + $0x4]]  ;;  %s134_s24 = int_to_ptr.vmem [resolvable:$true] %s133_s24 }
  0xb0   :  { %s2242_s22 = scalar_lea.hbm %s123_s21, 16  ;;  %p2245_p2 = scmp.lt.u32.totalorder %s123_s21, %s3455_s1 }
  0xb1   :  { %p2243_p1 = scmp.ne.s32.totalorder %s123_s21, %s2242_s22  ;;  %p2246_p3 = scmp.lt.u32.totalorder %s2669_s0, %s2242_s22 }
  0xb2   :  { %p2248_p5 = scmp.lt.u32.totalorder %s2242_s22, %s123_s21 }
  0xb3   :  { %p2247_p4 = por %p2246_p3, %p2245_p2 }
  0xb5   :  { %p2249_p6 = por %p2248_p5, %p2247_p4 }
  0xb7   :  { %p2250_p7 = pnand %p2249_p6, %p2243_p1 }
  0xb9   :  { %2253 = shalt.err (!%p2250_p7)  }
  0xba   :  { %s2254_s29 = scalar_lea.vmem %s134_s24, 16  ;;  %p2259_p9 = scmp.lt.s32.totalorder %s134_s24, %s2639_s18 }
  0xbb   :  { %p2255_p8 = scmp.ne.s32.totalorder %s134_s24, %s2254_s29  ;;  %p2260_p10 = scmp.lt.s32.totalorder %s2678_s17, %s2254_s29 }
  0xbd   :  { %p2261_p11 = por %p2260_p10, %p2259_p9 }
  0xbf   :  { %p2262_p12 = pnand %p2261_p11, %p2255_p8 }
  0xc1   :  { %2265 = shalt.err (!%p2262_p12)  }
  0xc2   :  { %136 = dma.hbm_to_vmem [thread:$0]  %s123_s21, 16, %s134_s24, [#allocation3 + $0x3]  ;;  %1888 = vmatpush1.bf16.msra.mxu1 %v1887_v27  ;;  %v1891_v34 = vpack.c.bf16 %v321_v31, %v318_v30  ;;  %v1893_v35 = vpack.c.bf16 %v328_v33, %v325_v32  ;;  %v324_v36 = vld [vmem:[#allocation9 + $0x120] sm:$0xff]  ;;  %v327_v37 = vld [vmem:[#allocation9 + $0x138] sm:$0xff]  ;;  %v334_v39 = vld [vmem:[#allocation9 + $0x170] sm:$0xff] }
  0xc3   :  { %s2446_s11 = smov [#allocation2 + $0x4]   ;;  %s2748_s27 = sld [smem:[#allocation5 + $0x5]]  ;;  %1890 = vmatprep.subr.bf16.mxu1 %v1889_v29  ;;  %v331_v38 = vld [vmem:[#allocation9 + $0x158] sm:$0xff]  ;;  %v1895_v40 = vpack.c.bf16 %v327_v37, %v324_v36 }
  0xc4   :  { %s149_s20 = sshll.u32 %s2446_s11, 4  ;;  %s2447_s30 = smov [#allocation2 + $0x5]   ;;  %v1897_v41 = vpack.c.bf16 %v334_v39, %v331_v38  ;;  %s2750_s20 = int_to_ptr.vmem [resolvable:$true] %s149_s20 }
  0xc5   :  { %s165_s15 = sshll.u32 %s2447_s30, 4  ;;  %s2752_s16 = sld [smem:[#allocation5 + $0x6]]  ;;  %s2755_s15 = int_to_ptr.vmem [resolvable:$true] %s165_s15 }
  0xc6   :  { %s1514_s19 = sshll.u32 %s2740_s25, 4  ;;  %1892 = vmatpush1.bf16.msra.mxu1 %v1891_v34 }
  0xc7   :  { %s139_s23 = scalar_lea.hbm %s3455_s1, %s1514_s19  ;;  %1894 = vmatprep.subr.bf16.mxu1 %v1893_v35 }
  0xc8   :  { %s2266_s14 = scalar_lea.hbm %s139_s23, 16  ;;  %p2269_p0 = scmp.lt.u32.totalorder %s139_s23, %s3455_s1 }
  0xc9   :  { %p2267_p13 = scmp.ne.s32.totalorder %s139_s23, %s2266_s14  ;;  %p2270_p1 = scmp.lt.u32.totalorder %s2669_s0, %s2266_s14 }
  0xca   :  { %p2272_p3 = scmp.lt.u32.totalorder %s2266_s14, %s139_s23 }
  0xcb   :  { %p2271_p2 = por %p2270_p1, %p2269_p0 }
  0xcd   :  { %p2273_p4 = por %p2272_p3, %p2271_p2 }
  0xcf   :  { %p2274_p5 = pnand %p2273_p4, %p2267_p13 }
  0xd1   :  { %2277 = shalt.err (!%p2274_p5)  }
  0xd2   :  { %s2278_s24 = scalar_lea.vmem %s2750_s20, 16  ;;  %p2283_p7 = scmp.lt.s32.totalorder %s2750_s20, %s2639_s18 }
  0xd3   :  { %p2279_p6 = scmp.ne.s32.totalorder %s2750_s20, %s2278_s24  ;;  %p2284_p8 = scmp.lt.s32.totalorder %s2678_s17, %s2278_s24 }
  0xd5   :  { %p2285_p9 = por %p2284_p8, %p2283_p7 }
  0xd7   :  { %p2286_p10 = pnand %p2285_p9, %p2279_p6 }
  0xd9   :  { %2289 = shalt.err (!%p2286_p10)  }
  0xda   :  { %152 = dma.hbm_to_vmem [thread:$0]  %s139_s23, 16, %s2750_s20, [#allocation3 + $0x4]  ;;  %v330_v42 = vld [vmem:[#allocation9 + $0x150] sm:$0xff]  ;;  %v333_v43 = vld [vmem:[#allocation9 + $0x168] sm:$0xff]  ;;  %1896 = vmatpush1.bf16.msra.mxu1 %v1895_v40 }
  0xdb   :  { %s1516_s25 = sshll.u32 %s2748_s27, 4  ;;  %s2448_s22 = smov [#allocation2 + $0x6]   ;;  %v1899_v44 = vpack.c.bf16 %v333_v43, %v330_v42 }
  0xdc   :  { %s181_s26 = sshll.u32 %s2448_s22, 4  ;;  %s155_s11 = scalar_lea.hbm %s3455_s1, %s1516_s25  ;;  %s2774_s26 = int_to_ptr.vmem [resolvable:$true] %s181_s26 }
  0xdd   :  { %s2290_s30 = scalar_lea.hbm %s155_s11, 16  ;;  %p2293_p12 = scmp.lt.u32.totalorder %s155_s11, %s3455_s1 }
  0xde   :  { %p2291_p11 = scmp.ne.s32.totalorder %s155_s11, %s2290_s30  ;;  %p2294_p13 = scmp.lt.u32.totalorder %s2669_s0, %s2290_s30 }
  0xdf   :  { %p2296_p1 = scmp.lt.u32.totalorder %s2290_s30, %s155_s11 }
  0xe0   :  { %p2295_p0 = por %p2294_p13, %p2293_p12 }
  0xe2   :  { %p2297_p2 = por %p2296_p1, %p2295_p0 }
  0xe4   :  { %p2298_p3 = pnand %p2297_p2, %p2291_p11 }
  0xe6   :  { %2301 = shalt.err (!%p2298_p3)  }
  0xe7   :  { %s2302_s20 = scalar_lea.vmem %s2755_s15, 16  ;;  %p2307_p5 = scmp.lt.s32.totalorder %s2755_s15, %s2639_s18 }
  0xe8   :  { %p2303_p4 = scmp.ne.s32.totalorder %s2755_s15, %s2302_s20  ;;  %p2308_p6 = scmp.lt.s32.totalorder %s2678_s17, %s2302_s20 }
  0xea   :  { %p2309_p7 = por %p2308_p6, %p2307_p5 }
  0xec   :  { %p2310_p8 = pnand %p2309_p7, %p2303_p4 }
  0xee   :  { %2313 = shalt.err (!%p2310_p8)  }
  0xef   :  { %168 = dma.hbm_to_vmem [thread:$0]  %s155_s11, 16, %s2755_s15, [#allocation3 + $0x5]  ;;  %1898 = vmatprep.subr.bf16.mxu1 %v1897_v41 }
  0xf0   :  { %s1518_s27 = sshll.u32 %s2752_s16, 4  ;;  %s1519_s6 = sld [smem:[#allocation5 + $0x7]] }
  0xf1   :  { %s171_s21 = scalar_lea.hbm %s3455_s1, %s1518_s27 }
  0xf2   :  { %s2314_s9 = scalar_lea.hbm %s171_s21, 16  ;;  %p2317_p10 = scmp.lt.u32.totalorder %s171_s21, %s3455_s1 }
  0xf3   :  { %p2315_p9 = scmp.ne.s32.totalorder %s171_s21, %s2314_s9  ;;  %p2318_p11 = scmp.lt.u32.totalorder %s2669_s0, %s2314_s9 }
  0xf4   :  { %p2320_p13 = scmp.lt.u32.totalorder %s2314_s9, %s171_s21 }
  0xf5   :  { %p2319_p12 = por %p2318_p11, %p2317_p10 }
  0xf7   :  { %p2321_p0 = por %p2320_p13, %p2319_p12 }
  0xf9   :  { %p2322_p1 = pnand %p2321_p0, %p2315_p9 }
  0xfb   :  { %2325 = shalt.err (!%p2322_p1)  }
  0xfc   :  { %s2326_s15 = scalar_lea.vmem %s2774_s26, 16  ;;  %p2331_p3 = scmp.lt.s32.totalorder %s2774_s26, %s2639_s18 }
  0xfd   :  { %p2327_p2 = scmp.ne.s32.totalorder %s2774_s26, %s2326_s15  ;;  %p2332_p4 = scmp.lt.s32.totalorder %s2678_s17, %s2326_s15 }
  0xff   :  { %p2333_p5 = por %p2332_p4, %p2331_p3 }
 0x101   :  { %p2334_p6 = pnand %p2333_p5, %p2327_p2 }
 0x103   :  { %2337 = shalt.err (!%p2334_p6)  }
 0x104   :  { %184 = dma.hbm_to_vmem [thread:$0]  %s171_s21, 16, %s2774_s26, [#allocation3 + $0x6]  ;;  %1900 = vmatpush1.bf16.msra.mxu1 %v1899_v44 }
 0x105   :  { %s2449_s16 = smov [#allocation2 + $0x7]   ;;  %s1520_s28 = sshll.u32 %s1519_s6, 4 }
 0x106   :  { %s197_s22 = sshll.u32 %s2449_s16, 4  ;;  %s187_s30 = scalar_lea.hbm %s3455_s1, %s1520_s28  ;;  %s198_s22 = int_to_ptr.vmem [resolvable:$true] %s197_s22 }
 0x107   :  { %418 = vmatmul.mubr.f32.vlgmr.msra.gmra.mrb[0].mxu1 %v2621_v28  ;;  %s2338_s19 = scalar_lea.hbm %s187_s30, 16  ;;  %p2341_p8 = scmp.lt.u32.totalorder %s187_s30, %s3455_s1 }
 0x108   :  { %p2339_p7 = scmp.ne.s32.totalorder %s187_s30, %s2338_s19  ;;  %p2342_p9 = scmp.lt.u32.totalorder %s2669_s0, %s2338_s19 }
 0x109   :  { %p2344_p11 = scmp.lt.u32.totalorder %s2338_s19, %s187_s30 }
 0x10a   :  { %p2343_p10 = por %p2342_p9, %p2341_p8 }
 0x10c   :  { %p2345_p12 = por %p2344_p11, %p2343_p10 }
 0x10e   :  { %p2346_p13 = pnand %p2345_p12, %p2339_p7 }
 0x110   :  { %2349 = shalt.err (!%p2346_p13)  }
 0x111   :  { %s2350_s26 = scalar_lea.vmem %s198_s22, 16  ;;  %p2355_p1 = scmp.lt.s32.totalorder %s198_s22, %s2639_s18 }
 0x112   :  { %p2351_p0 = scmp.ne.s32.totalorder %s198_s22, %s2350_s26  ;;  %p2356_p2 = scmp.lt.s32.totalorder %s2678_s17, %s2350_s26 }
 0x114   :  { %p2357_p3 = por %p2356_p2, %p2355_p1 }
 0x116   :  { %p2358_p4 = pnand %p2357_p3, %p2351_p0 }
 0x118   :  { %2361 = shalt.err (!%p2358_p4)  }
 0x119   :  { %200 = dma.hbm_to_vmem [thread:$0]  %s187_s30, 16, %s198_s22, [#allocation3 + $0x7]  ;;  %v348_v47 = vsub.s32 2, %v2645_v9 }
 0x11b   :  { %v349_v48 = vrot.slane %v2693_v19, %v348_v47 }
 0x12d   :  { %v2810_v45 = vpop.f32.mrb[0].mxu0 }
 0x12e   :  { %v1669_v46 = vpop.f32.mrb[1].mxu0 }
 0x14d   :  { %v490_v49 = vpop.f32.mrb[2].mxu0 }
 0x14e   :  { %v2816_v50 = vadd.f32 %v490_v49, %v349_v48  ;;  %v1704_v51 = vpop.f32.mrb[3].mxu0 }
 0x14f   :  { %2412 = dma.done.wait [#allocation3], 16 }
 0x150   :  { %2413 = vsyncadd [#allocation3], 4294967280 }
 0x151   :  { %2414 = dma.done.wait [#allocation3 + $0x1], 16 }
 0x152   :  { %2415 = vsyncadd [#allocation3 + $0x1], 4294967280 }
 0x153   :  { %2416 = dma.done.wait [#allocation3 + $0x2], 16 }
 0x154   :  { %2417 = vsyncadd [#allocation3 + $0x2], 4294967280 }
 0x155   :  { %2418 = dma.done.wait [#allocation3 + $0x3], 16 }
 0x156   :  { %2419 = vsyncadd [#allocation3 + $0x3], 4294967280 }
 0x157   :  { %2420 = dma.done.wait [#allocation3 + $0x4], 16 }
 0x158   :  { %2421 = vsyncadd [#allocation3 + $0x4], 4294967280 }
 0x159   :  { %2422 = dma.done.wait [#allocation3 + $0x5], 16 }
 0x15a   :  { %2423 = vsyncadd [#allocation3 + $0x5], 4294967280 }
 0x15b   :  { %2424 = dma.done.wait [#allocation3 + $0x6], 16 }
 0x15c   :  { %2425 = vsyncadd [#allocation3 + $0x6], 4294967280 }
 0x15d   :  { %2426 = dma.done.wait [#allocation3 + $0x7], 16 }
 0x15e   :  { %2427 = vsyncadd [#allocation3 + $0x7], 4294967280  ;;  %1925 = vmatprep.subr.bf16.mxu1 %v2439_v0  ;;  %1737 = vmatprep.mubr.msk.f32.mxu1 %vm2440_vm0, %v2441_v1  ;;  %v512_v52 = vld [vmem:[%s3458_s4] sm:$0xff]  ;;  %v513_v53 = vld [vmem:[%s3458_s4 + $0x8] sm:$0xff]  ;;  %vm606_vm1 = vcmask 80896   ;;  %v2450_v32 = vmov 2  }
 0x15f   :  { %1949 = vmatprep.subr.bf16.mxu0 %v2439_v0  ;;  %1772 = vmatprep.mubr.msk.f32.mxu0 %vm2440_vm0, %v2441_v1  ;;  %v514_v54 = vld [vmem:[%s3458_s4 + $0x10] sm:$0xff]  ;;  %v1926_v55 = vpack.c.bf16 %v513_v53, %v512_v52  ;;  %v515_v56 = vld [vmem:[%s3458_s4 + $0x18] sm:$0xff]  ;;  %v516_v58 = vld [vmem:[%s3458_s4 + $0x20] sm:$0xff]  ;;  %v2451_v33 = vmov 0   ;;  %v2452_v37 = vmov 1   ;;  %v2453_v38 = vmov 9  }
 0x160   :  { %v1929_v57 = vpack.c.bf16 %v515_v56, %v514_v54  ;;  %v517_v59 = vld [vmem:[%s3458_s4 + $0x28] sm:$0xff]  ;;  %v518_v61 = vld [vmem:[%s3458_s4 + $0x30] sm:$0xff]  ;;  %v519_v62 = vld [vmem:[%s3458_s4 + $0x38] sm:$0xff]  ;;  %2091 = vset.pattern.permute.xlu0 %v2450_v32  ;;  %2089 = vset.pattern.permute.xlu1 %v2451_v33  ;;  %v2454_v39 = vmov 3   ;;  %v2455_v49 = vmov 4   ;;  %vm641_vm2 = vcmask 1041409  }
 0x161   :  { %1927 = vmatpush3.bf16.msra.mxu1 %v1926_v55  ;;  %v1932_v60 = vpack.c.bf16 %v517_v59, %v516_v58  ;;  %v1935_v63 = vpack.c.bf16 %v519_v62, %v518_v61  ;;  %v520_v2 = vld [vmem:[%s3458_s4 + $0x40] sm:$0xff]  ;;  %v521_v3 = vld [vmem:[%s3458_s4 + $0x48] sm:$0xff]  ;;  %v522_v5 = vld [vmem:[%s3458_s4 + $0x50] sm:$0xff]  ;;  %vm644_vm3 = vcmask 1042434   ;;  %vm647_vm4 = vcmask 1043459   ;;  %s2460_s28 = smov [#allocation12]  }
 0x162   :  { %1928 = vmatprep.subr.bf16.mxu1 %v2439_v0  ;;  %v1938_v4 = vpack.c.bf16 %v521_v3, %v520_v2  ;;  %v523_v6 = vld [vmem:[%s3458_s4 + $0x58] sm:$0xff]  ;;  %v524_v8 = vld [vmem:[%s3458_s4 + $0x60] sm:$0xff]  ;;  %v525_v10 = vld [vmem:[%s3458_s4 + $0x68] sm:$0xff]  ;;  %vm650_vm5 = vcmask 1044484   ;;  %vm653_vm6 = vcmask 1045509   ;;  %vm656_vm7 = vcmask 1046534  }
 0x163   :  { %v1941_v7 = vpack.c.bf16 %v523_v6, %v522_v5  ;;  %v1944_v11 = vpack.c.bf16 %v525_v10, %v524_v8  ;;  %v526_v12 = vld [vmem:[%s3458_s4 + $0x70] sm:$0xff]  ;;  %v527_v13 = vld [vmem:[%s3458_s4 + $0x78] sm:$0xff]  ;;  %v2879_v17 = vld [vmem:[#allocation2] sm:$0xff]  ;;  %v2457_v6 = vmov 6   ;;  %vm659_vm8 = vcmask 1047559   ;;  %s1421_s29 = sshll.u32 %s2460_s28, 4  ;;  %s1422_s29 = int_to_ptr.vmem [resolvable:$true] %s1421_s29 }
 0x164   :  { %v1947_v16 = vpack.c.bf16 %v527_v13, %v526_v12  ;;  %v1521_v19 = vld [vmem:[%s3459_s5] ss:$0 sm:$0xff]  ;;  %v996_v40 = vld [vmem:[#allocation6] sm:$0xff]  ;;  %v997_v41 = vld [vmem:[#allocation6 + $0x8] sm:$0xff]  ;;  %s2362_s11 = scalar_lea.vmem %s1422_s29, 128  ;;  %p2367_p6 = scmp.lt.s32.totalorder %s1422_s29, %s1422_s29 }
 0x165   :  { %1930 = vmatpush3.bf16.msra.mxu1 %v1929_v57  ;;  %v1974_v42 = vpack.c.bf16 %v997_v41, %v996_v40  ;;  %v1012_v43 = vld [vmem:[#allocation6 + $0x80] sm:$0xff]  ;;  %v1013_v44 = vld [vmem:[#allocation6 + $0x88] sm:$0xff]  ;;  %v998_v46 = vld [vmem:[#allocation6 + $0x10] sm:$0xff]  ;;  %p2363_p5 = scmp.ne.s32.totalorder %s1422_s29, %s2362_s11  ;;  %p2368_p7 = scmp.lt.s32.totalorder %s2362_s11, %s2362_s11 }
 0x166   :  { %1931 = vmatprep.subr.bf16.mxu1 %v2439_v0  ;;  %v999_v48 = vld [vmem:[#allocation6 + $0x18] sm:$0xff]  ;;  %v1014_v52 = vld [vmem:[#allocation6 + $0x90] sm:$0xff]  ;;  %v1000_v55 = vld [vmem:[#allocation6 + $0x20] sm:$0xff] }
 0x167   :  { %v1977_v51 = vpack.c.bf16 %v999_v48, %v998_v46  ;;  %v1015_v53 = vld [vmem:[#allocation6 + $0x98] sm:$0xff]  ;;  %v1001_v56 = vld [vmem:[#allocation6 + $0x28] sm:$0xff]  ;;  %v1016_v58 = vld [vmem:[#allocation6 + $0xa0] sm:$0xff]  ;;  %p2369_p8 = por %p2368_p7, %p2367_p6 }
 0x168   :  { %v1953_v54 = vpack.c.bf16 %v1015_v53, %v1014_v52  ;;  %v1980_v57 = vpack.c.bf16 %v1001_v56, %v1000_v55  ;;  %v1017_v59 = vld [vmem:[#allocation6 + $0xa8] sm:$0xff]  ;;  %v1002_v62 = vld [vmem:[#allocation6 + $0x30] sm:$0xff]  ;;  %v1027_v40 = vld [vmem:[#allocation6 + $0xf8] sm:$0xff] }
 0x169   :  { %1933 = vmatpush3.bf16.msra.mxu1 %v1932_v60  ;;  %v2456_v60 = vmov 5   ;;  %v1956_v61 = vpack.c.bf16 %v1017_v59, %v1016_v58  ;;  %v1018_v3 = vld [vmem:[#allocation6 + $0xb0] sm:$0xff]  ;;  %v1005_v8 = vld [vmem:[#allocation6 + $0x48] sm:$0xff]  ;;  %v1190_v53 = vld [vmem:[%s3462_s8 + $0x68] sm:$0xff]  ;;  %p2370_p9 = pnand %p2369_p8, %p2363_p5 }
 0x16a   :  { %1934 = vmatprep.subr.bf16.mxu1 %v2439_v0  ;;  %v1021_v12 = vld [vmem:[#allocation6 + $0xc8] sm:$0xff]  ;;  %v1189_v56 = vld [vmem:[%s3462_s8 + $0x60] sm:$0xff]  ;;  %v1196_v59 = vld [vmem:[%s3462_s8 + $0x98] sm:$0xff] }
 0x16b   :  { %v1025_v32 = vld [vmem:[#allocation6 + $0xe8] sm:$0xff] }
 0x16c   :  { %v1187_v46 = vld [vmem:[%s3462_s8 + $0x50] sm:$0xff] }
 0x16d   :  { %1936 = vmatpush3.bf16.msra.mxu1 %v1935_v63  ;;  %v1003_v63 = vld [vmem:[#allocation6 + $0x38] sm:$0xff]  ;;  %v1183_v48 = vld [vmem:[%s3462_s8 + $0x30] sm:$0xff] }
 0x16e   :  { %1937 = vmatprep.subr.bf16.mxu1 %v2439_v0  ;;  %v1983_v2 = vpack.c.bf16 %v1003_v63, %v1002_v62  ;;  %v1195_v62 = vld [vmem:[%s3462_s8 + $0x90] sm:$0xff]  ;;  %v1198_v63 = vld [vmem:[%s3462_s8 + $0xa8] sm:$0xff] }
 0x171   :  { %1939 = vmatpush3.bf16.msra.mxu1 %v1938_v4  ;;  %v1019_v4 = vld [vmem:[#allocation6 + $0xb8] sm:$0xff] }
 0x172   :  { %1940 = vmatprep.subr.bf16.mxu1 %v2439_v0  ;;  %v1959_v5 = vpack.c.bf16 %v1019_v4, %v1018_v3  ;;  %v1202_v3 = vld [vmem:[%s3462_s8 + $0xc8] sm:$0xff]  ;;  %v1205_v4 = vld [vmem:[%s3462_s8 + $0xe0] sm:$0xff] }
 0x175   :  { %1942 = vmatpush3.bf16.msra.mxu1 %v1941_v7  ;;  %v1004_v7 = vld [vmem:[#allocation6 + $0x40] sm:$0xff] }
 0x176   :  { %1943 = vmatprep.subr.bf16.mxu1 %v2439_v0  ;;  %v1986_v10 = vpack.c.bf16 %v1005_v8, %v1004_v7  ;;  %v1204_v7 = vld [vmem:[%s3462_s8 + $0xd8] sm:$0xff] }
 0x179   :  { %1945 = vmatpush3.bf16.msra.mxu1 %v1944_v11  ;;  %v1020_v11 = vld [vmem:[#allocation6 + $0xc0] sm:$0xff] }
 0x17a   :  { %1946 = vmatprep.subr.bf16.mxu1 %v2439_v0  ;;  %v1962_v13 = vpack.c.bf16 %v1021_v12, %v1020_v11  ;;  %v1211_v11 = vld [vmem:[%s3462_s8 + $0x110] sm:$0xff] }
 0x17d   :  { %1948 = vmatpush3.bf16.msra.mxu1 %v1947_v16  ;;  %v2458_v16 = vmov 7  }
 0x17e   :  { %1973 = vmatprep.subr.bf16.mxu1 %v2439_v0 }
 0x180   :  { %1738 = vmatmul.mubr.f32.vlgmr.msra.gmra.mrb[2].mxu1 %v2879_v17 }
 0x181   :  { %1807 = vmatprep.mubr.msk.f32.mxu1 %vm2440_vm0, %v2441_v1  ;;  %1975 = vmatpush3.bf16.msra.mxu1 %v1974_v42  ;;  %v1178_v42 = vld [vmem:[%s3462_s8 + $0x8] sm:$0xff] }
 0x182   :  { %1976 = vmatprep.subr.bf16.mxu1 %v2439_v0 }
 0x185   :  { %1978 = vmatpush3.bf16.msra.mxu1 %v1977_v51  ;;  %v1186_v51 = vld [vmem:[%s3462_s8 + $0x48] sm:$0xff] }
 0x186   :  { %1979 = vmatprep.subr.bf16.mxu1 %v2439_v0  ;;  %v2003_v52 = vpack.c.bf16 %v1186_v51, %v1183_v48  ;;  %v623_v51 = vld [vmem:[%s3457_s3 + $0x40] sm:$0x1] }
 0x189   :  { %1981 = vmatpush3.bf16.msra.mxu1 %v1980_v57  ;;  %v1192_v57 = vld [vmem:[%s3462_s8 + $0x78] sm:$0xff] }
 0x18a   :  { %1982 = vmatprep.subr.bf16.mxu1 %v2439_v0  ;;  %v2007_v58 = vpack.c.bf16 %v1192_v57, %v1189_v56  ;;  %v3060_v56 = vld [vmem:[%s3457_s3 + $0x72] sm:$0x1] }
 0x18d   :  { %1984 = vmatpush3.bf16.msra.mxu1 %v1983_v2  ;;  %v2011_v2 = vpack.c.bf16 %v1198_v63, %v1195_v62 }
 0x18e   :  { %1985 = vmatprep.subr.bf16.mxu1 %v2439_v0 }
 0x191   :  { %1987 = vmatpush3.bf16.msra.mxu1 %v1986_v10  ;;  %v1208_v10 = vld [vmem:[%s3462_s8 + $0xf8] sm:$0xff] }
 0x192   :  { %1988 = vmatprep.subr.bf16.mxu1 %v2439_v0  ;;  %v2017_v12 = vpack.c.bf16 %v1211_v11, %v1208_v10  ;;  %v732_v10 = vrot.slane %v3060_v56, 1  ;;  %v625_v11 = vld [vmem:[%s3457_s3 + $0x60] sm:$0x1] }
 0x253   :  { %v594_v18 = vpop.f32.mrb[2].mxu1 }
 0x254   :  { %v595_v20 = vadd.f32 %v594_v18, %v2810_v45  ;;  %v1739_v21 = vpop.f32.mrb[3].mxu1  ;;  %v1950_v45 = vpack.c.bf16 %v1013_v44, %v1012_v43  ;;  %v1006_v18 = vld [vmem:[#allocation6 + $0x50] sm:$0xff]  ;;  %v1181_v43 = vld [vmem:[%s3462_s8 + $0x20] sm:$0xff] }
 0x255   :  { %v1022_v21 = vld [vmem:[#allocation6 + $0xd0] sm:$0xff] }
 0x256   :  { %v605_v22 = vadd.f32 %v1521_v19, %v595_v20  ;;  %1951 = vmatpush3.bf16.msra.mxu0 %v1950_v45  ;;  %v1007_v19 = vld [vmem:[#allocation6 + $0x58] sm:$0xff]  ;;  %v1180_v44 = vld [vmem:[%s3462_s8 + $0x18] sm:$0xff] }
 0x257   :  { %1952 = vmatprep.subr.bf16.mxu0 %v2439_v0  ;;  %v1989_v20 = vpack.c.bf16 %v1007_v19, %v1006_v18  ;;  %v1184_v45 = vld [vmem:[%s3462_s8 + $0x38] sm:$0xff]  ;;  %v701_v19 = vld [vmem:[%s3457_s3 + $0x12] sm:$0x1] }
 0x258   :  { %v607_v25 = vsel %vm606_vm1, %v605_v22, -inf }
 0x259   :  { %608 = vmax.xlane.f32.xlu0 %v607_v25  ;;  %1990 = vmatpush3.bf16.msra.mxu1 %v1989_v20  ;;  %v702_v20 = vld [vmem:[%s3457_s3 + $0x22] sm:$0x1] }
 0x25a   :  { %1954 = vmatpush3.bf16.msra.mxu0 %v1953_v54  ;;  %1991 = vmatprep.subr.bf16.mxu1 %v2439_v0  ;;  %v1193_v54 = vld [vmem:[%s3462_s8 + $0x80] sm:$0xff] }
 0x25b   :  { %1955 = vmatprep.subr.bf16.mxu0 %v2439_v0  ;;  %v2005_v55 = vpack.c.bf16 %v1193_v54, %v1190_v53  ;;  %v737_v54 = vld [vmem:[%s3457_s3 + $0x3] sm:$0x1] }
 0x25e   :  { %1957 = vmatpush3.bf16.msra.mxu0 %v1956_v61 }
 0x25f   :  { %1958 = vmatprep.subr.bf16.mxu0 %v2439_v0 }
 0x262   :  { %1960 = vmatpush3.bf16.msra.mxu0 %v1959_v5  ;;  %v2013_v5 = vpack.c.bf16 %v1205_v4, %v1202_v3  ;;  %v649_v3 = vrot.slane %v623_v51, 4 }
 0x263   :  { %1961 = vmatprep.subr.bf16.mxu0 %v2439_v0 }
 0x266   :  { %1963 = vmatpush3.bf16.msra.mxu0 %v1962_v13  ;;  %v1207_v13 = vld [vmem:[%s3462_s8 + $0xf0] sm:$0xff] }
 0x267   :  { %1964 = vmatprep.subr.bf16.mxu0 %v2439_v0 }
 0x2e6   :  { %v609_v26 = vpop.xlane.xlu0 %608 }
 0x2e7   :  { %v610_v27 = vsub.f32 %v605_v22, %v609_v26  ;;  %v1023_v22 = vld [vmem:[#allocation6 + $0xd8] sm:$0xff]  ;;  %v1008_v26 = vld [vmem:[#allocation6 + $0x60] sm:$0xff] }
 0x2e8   :  { %v1965_v25 = vpack.c.bf16 %v1023_v22, %v1022_v21  ;;  %v720_v21 = vrot.slane %v701_v19, 7  ;;  %v620_v22 = vld [vmem:[%s3457_s3 + $0x10] sm:$0x1]  ;;  %v668_v19 = vld [vmem:[%s3457_s3 + $0x51] sm:$0x1] }
 0x2e9   :  { %v611_v29 = vmul.f32 1.442695, %v610_v27  ;;  %v1009_v27 = vld [vmem:[#allocation6 + $0x68] sm:$0xff] }
 0x2ea   :  { %1966 = vmatpush3.bf16.msra.mxu0 %v1965_v25  ;;  %v700_v25 = vld [vmem:[%s3457_s3 + $0x2] sm:$0x1] }
 0x2eb   :  { %2100 = vpow2.f32 %v611_v29  ;;  %v2459_v29 = vmov 8   ;;  %1967 = vmatprep.subr.bf16.mxu0 %v2439_v0 }
 0x2f5   :  { %v2101_v30 = vpop.eup %2100 }
 0x2f6   :  { %v613_v31 = vsel %vm606_vm1, %v2101_v30, 0.0 }
 0x2f7   :  { %614 = vadd.xlane.f32.xlu0 %v613_v31  ;;  %v1024_v31 = vld [vmem:[#allocation6 + $0xe0] sm:$0xff] }
 0x2f8   :  { %v1968_v33 = vpack.c.bf16 %v1025_v32, %v1024_v31  ;;  %v640_v31 = vrot.slane %v620_v22, 7  ;;  %v704_v32 = vld [vmem:[%s3457_s3 + $0x42] sm:$0x1] }
 0x2fa   :  { %1969 = vmatpush3.bf16.msra.mxu0 %v1968_v33  ;;  %v721_v33 = vsel %vm641_vm2, %v720_v21, %v700_v25  ;;  %v741_v21 = vld [vmem:[%s3457_s3 + $0x43] sm:$0x1] }
 0x2fb   :  { %1970 = vmatprep.subr.bf16.mxu0 %v2439_v0 }
 0x384   :  { %v615_v34 = vpop.xlane.xlu0 %614 }
 0x385   :  { %2102 = vrcp.f32 %v615_v34  ;;  %v1010_v34 = vld [vmem:[#allocation6 + $0x70] sm:$0xff] }
 0x38f   :  { %v2103_v35 = vpop.eup %2102 }
 0x390   :  { %v2891_v36 = vmul.f32 %v2103_v35, %v2101_v30  ;;  %v1992_v30 = vpack.c.bf16 %v1009_v27, %v1008_v26  ;;  %v1011_v35 = vld [vmem:[#allocation6 + $0x78] sm:$0xff]  ;;  %v664_v26 = vld [vmem:[%s3457_s3 + $0x11] sm:$0x1]  ;;  %v703_v27 = vld [vmem:[%s3457_s3 + $0x32] sm:$0x1] }
 0x392   :  { %618 = vst.msk [vmem:[#allocation12] sm:$0xff] %vm606_vm1, %v2891_v36  ;;  %709 = vperm.xlu0 %2091, %v2891_v36   ;;  %629 = vperm.xlu1 %2089, %v2891_v36  }
 0x393   :  { %1993 = vmatpush3.bf16.msra.mxu1 %v1992_v30  ;;  %v621_v30 = vld [vmem:[%s3457_s3 + $0x20] sm:$0x1] }
 0x394   :  { %1994 = vmatprep.subr.bf16.mxu1 %v2439_v0 }
 0x396   :  { %2090 = vset.pattern.permute.xlu1 %v2452_v37  ;;  %2099 = vset.pattern.permute.xlu0 %v2453_v38  ;;  %v1995_v37 = vpack.c.bf16 %v1011_v35, %v1010_v34  ;;  %v619_v34 = vld [vmem:[%s3457_s3] sm:$0x1]  ;;  %v665_v35 = vld [vmem:[%s3457_s3 + $0x21] sm:$0x1] }
 0x397   :  { %672 = vperm.xlu1 %2090, %v2891_v36  }
 0x398   :  { %1996 = vmatpush3.bf16.msra.mxu1 %v1995_v37  ;;  %v683_v37 = vrot.slane %v664_v26, 7  ;;  %v626_v26 = vld [vmem:[%s3457_s3 + $0x70] sm:$0x1] }
 0x399   :  { %v658_v56 = vrot.slane %v626_v26, 1 }
 0x39b   :  { %2092 = vset.pattern.permute.xlu1 %v2454_v39  ;;  %v1026_v39 = vld [vmem:[#allocation6 + $0xf0] sm:$0xff]  ;;  %1808 = vmatmul.mubr.f32.vlgmr.msra.gmra.mrb[4].mxu1 %v2879_v17 }
 0x39c   :  { %746 = vperm.xlu1 %2092, %v2891_v36   ;;  %v1971_v41 = vpack.c.bf16 %v1027_v40, %v1026_v39  ;;  %1306 = vmatprep.mubr.f32.mxu1 %v2441_v1  ;;  %v738_v39 = vld [vmem:[%s3457_s3 + $0x13] sm:$0x1]  ;;  %v724_v40 = vrot.slane %v703_v27, 5 }
 0x39d   :  { %v757_v48 = vrot.slane %v738_v39, 7  ;;  %v812_v39 = vld [vmem:[%s3457_s3 + $0x15] sm:$0x1] }
 0x39e   :  { %1972 = vmatpush3.bf16.msra.mxu0 %v1971_v41  ;;  %v622_v41 = vld [vmem:[%s3457_s3 + $0x30] sm:$0x1] }
 0x39f   :  { %2029 = vmatprep.subr.bf16.mxu0 %v2439_v0 }
 0x3a0   :  { %2093 = vset.pattern.permute.xlu1 %v2455_v49  ;;  %v2001_v49 = vpack.c.bf16 %v1187_v46, %v1184_v45  ;;  %v685_v45 = vrot.slane %v665_v35, 6  ;;  %v739_v46 = vld [vmem:[%s3457_s3 + $0x23] sm:$0x1]  ;;  %v669_v35 = vld [vmem:[%s3457_s3 + $0x61] sm:$0x1] }
 0x3a1   :  { %783 = vperm.xlu1 %2093, %v2891_v36   ;;  %v759_v62 = vrot.slane %v739_v46, 6 }
 0x3a5   :  { %2094 = vset.pattern.permute.xlu1 %v2456_v60  ;;  %v1199_v60 = vld [vmem:[%s3462_s8 + $0xb0] sm:$0xff] }
 0x3a6   :  { %820 = vperm.xlu1 %2094, %v2891_v36   ;;  %v2009_v61 = vpack.c.bf16 %v1199_v60, %v1196_v59  ;;  %v667_v59 = vld [vmem:[%s3457_s3 + $0x41] sm:$0x1] }
 0x3aa   :  { %2095 = vset.pattern.permute.xlu1 %v2457_v6  ;;  %v1201_v6 = vld [vmem:[%s3462_s8 + $0xc0] sm:$0xff] }
 0x3ab   :  { %857 = vperm.xlu1 %2095, %v2891_v36   ;;  %v2015_v8 = vpack.c.bf16 %v1204_v7, %v1201_v6  ;;  %v775_v6 = vld [vmem:[%s3457_s3 + $0x14] sm:$0x1] }
 0x3af   :  { %2096 = vset.pattern.permute.xlu1 %v2458_v16  ;;  %v1210_v16 = vld [vmem:[%s3462_s8 + $0x108] sm:$0xff] }
 0x3b0   :  { %894 = vperm.xlu1 %2096, %v2891_v36   ;;  %v2019_v18 = vpack.c.bf16 %v1210_v16, %v1207_v13  ;;  %v1214_v13 = vld [vmem:[%s3462_s8 + $0x128] sm:$0xff]  ;;  %v1217_v16 = vld [vmem:[%s3462_s8 + $0x140] sm:$0xff] }
 0x3b1   :  { %v2021_v25 = vpack.c.bf16 %v1217_v16, %v1214_v13 }
 0x3b4   :  { %2097 = vset.pattern.permute.xlu1 %v2459_v29  ;;  %v722_v29 = vrot.slane %v702_v20, 6  ;;  %v689_v20 = vrot.slane %v667_v59, 4 }
 0x3b5   :  { %931 = vperm.xlu1 %2097, %v2891_v36  }
 0x3b9   :  { %2098 = vset.pattern.permute.xlu1 %v2453_v38  ;;  %v1177_v38 = vld [vmem:[%s3462_s8] sm:$0xff] }
 0x3ba   :  { %968 = vperm.xlu1 %2098, %v2891_v36   ;;  %v1997_v36 = vpack.c.bf16 %v1181_v43, %v1178_v42  ;;  %v1999_v17 = vpack.c.bf16 %v1180_v44, %v1177_v38  ;;  %v643_v42 = vrot.slane %v621_v30, 6  ;;  %v663_v43 = vld [vmem:[%s3457_s3 + $0x1] sm:$0x1]  ;;  %v705_v38 = vld [vmem:[%s3457_s3 + $0x52] sm:$0x1]  ;;  %v642_v44 = vsel %vm641_vm2, %v640_v31, %v619_v34 }
 0x3bb   :  { %v684_v53 = vsel %vm641_vm2, %v683_v37, %v663_v43  ;;  %v728_v63 = vrot.slane %v705_v38, 3  ;;  %v776_v31 = vld [vmem:[%s3457_s3 + $0x24] sm:$0x1]  ;;  %v763_v43 = vrot.slane %v741_v21, 4  ;;  %v655_v38 = vrot.slane %v625_v11, 2 }
 0x3bc   :  { %1998 = vmatprep.subr.bf16.mxu1 %v1997_v36  ;;  %v723_v36 = vsel %vm644_vm3, %v722_v29, %v721_v33  ;;  %v686_v4 = vsel %vm644_vm3, %v685_v45, %v684_v53  ;;  %v774_v37 = vld [vmem:[%s3457_s3 + $0x4] sm:$0x1]  ;;  %v777_v45 = vld [vmem:[%s3457_s3 + $0x34] sm:$0x1]  ;;  %v796_v46 = vrot.slane %v776_v31, 6 }
 0x3bd   :  { %2000 = vmatpush1.bf16.msra.mxu1 %v1999_v17  ;;  %v666_v17 = vld [vmem:[%s3457_s3 + $0x31] sm:$0x1]  ;;  %v725_v57 = vsel %vm647_vm4, %v724_v40, %v723_v36  ;;  %v813_v53 = vld [vmem:[%s3457_s3 + $0x25] sm:$0x1]  ;;  %v848_v21 = vld [vmem:[%s3457_s3 + $0x6] sm:$0x1] }
 0x3be   :  { %2002 = vmatprep.subr.bf16.mxu1 %v2001_v49  ;;  %v726_v49 = vrot.slane %v704_v32, 4  ;;  %v687_v60 = vrot.slane %v666_v17, 5  ;;  %v794_v32 = vrot.slane %v775_v6, 7  ;;  %v670_v40 = vld [vmem:[%s3457_s3 + $0x71] sm:$0x1]  ;;  %v833_v11 = vrot.slane %v813_v53, 6 }
 0x3bf   :  { %v887_v31 = vld [vmem:[%s3457_s3 + $0x27] sm:$0x1]  ;;  %v960_v53 = vld [vmem:[%s3457_s3 + $0x19] sm:$0x1] }
 0x3c0   :  { %v727_v7 = vsel %vm650_vm5, %v726_v49, %v725_v57  ;;  %v688_v29 = vsel %vm647_vm4, %v687_v60, %v686_v4  ;;  %v693_v57 = vrot.slane %v669_v35, 2  ;;  %v811_v60 = vld [vmem:[%s3457_s3 + $0x5] sm:$0x1]  ;;  %v798_v4 = vrot.slane %v777_v45, 5 }
 0x3c1   :  { %2004 = vmatpush1.bf16.msra.mxu1 %v2003_v52  ;;  %v646_v52 = vrot.slane %v622_v41, 5  ;;  %v729_v33 = vsel %vm653_vm6, %v728_v63, %v727_v7  ;;  %v691_v41 = vrot.slane %v668_v19, 3  ;;  %v690_v36 = vsel %vm650_vm5, %v689_v20, %v688_v29  ;;  %v779_v19 = vld [vmem:[%s3457_s3 + $0x54] sm:$0x1] }
 0x3c2   :  { %2006 = vmatprep.subr.bf16.mxu1 %v2005_v55  ;;  %v706_v55 = vld [vmem:[%s3457_s3 + $0x62] sm:$0x1] }
 0x3c5   :  { %2008 = vmatpush1.bf16.msra.mxu1 %v2007_v58  ;;  %v645_v58 = vsel %vm644_vm3, %v643_v42, %v642_v44  ;;  %v742_v42 = vld [vmem:[%s3457_s3 + $0x53] sm:$0x1]  ;;  %v743_v44 = vld [vmem:[%s3457_s3 + $0x63] sm:$0x1] }
 0x3c6   :  { %2010 = vmatprep.subr.bf16.mxu1 %v2009_v61  ;;  %v740_v61 = vld [vmem:[%s3457_s3 + $0x33] sm:$0x1]  ;;  %v765_v59 = vrot.slane %v742_v42, 3 }
 0x3c7   :  { %v761_v22 = vrot.slane %v740_v61, 5  ;;  %v692_v61 = vsel %vm653_vm6, %v691_v41, %v690_v36  ;;  %v924_v36 = vld [vmem:[%s3457_s3 + $0x28] sm:$0x1] }
 0x3c9   :  { %2012 = vmatpush1.bf16.msra.mxu1 %v2011_v2  ;;  %v624_v2 = vld [vmem:[%s3457_s3 + $0x50] sm:$0x1] }
 0x3ca   :  { %2014 = vmatprep.subr.bf16.mxu1 %v2013_v5  ;;  %v758_v5 = vsel %vm641_vm2, %v757_v48, %v737_v54  ;;  %v652_v27 = vrot.slane %v624_v2, 3  ;;  %v831_v54 = vrot.slane %v812_v39, 7  ;;  %v767_v2 = vrot.slane %v743_v44, 2 }
 0x3cb   :  { %v760_v30 = vsel %vm644_vm3, %v759_v62, %v758_v5  ;;  %v744_v62 = vld [vmem:[%s3457_s3 + $0x73] sm:$0x1]  ;;  %v886_v5 = vld [vmem:[%s3457_s3 + $0x17] sm:$0x1] }
 0x3cc   :  { %v762_v17 = vsel %vm647_vm4, %v761_v22, %v760_v30  ;;  %v832_v20 = vsel %vm641_vm2, %v831_v54, %v811_v60  ;;  %v923_v22 = vld [vmem:[%s3457_s3 + $0x18] sm:$0x1]  ;;  %v815_v30 = vld [vmem:[%s3457_s3 + $0x45] sm:$0x1]  ;;  %v769_v41 = vrot.slane %v744_v62, 1 }
 0x3cd   :  { %2016 = vmatpush1.bf16.msra.mxu1 %v2015_v8  ;;  %v730_v8 = vrot.slane %v706_v55, 2  ;;  %v849_v55 = vld [vmem:[%s3457_s3 + $0x16] sm:$0x1]  ;;  %v764_v63 = vsel %vm650_vm5, %v763_v43, %v762_v17  ;;  %v834_v42 = vsel %vm644_vm3, %v833_v11, %v832_v20  ;;  %v942_v44 = vrot.slane %v923_v22, 7  ;;  %v817_v62 = vld [vmem:[%s3457_s3 + $0x65] sm:$0x1] }
 0x3ce   :  { %2018 = vmatprep.subr.bf16.mxu1 %v2017_v12  ;;  %v648_v12 = vsel %vm647_vm4, %v646_v52, %v645_v58  ;;  %v795_v52 = vsel %vm641_vm2, %v794_v32, %v774_v37  ;;  %v695_v58 = vrot.slane %v670_v40, 1  ;;  %v868_v13 = vrot.slane %v849_v55, 7  ;;  %v851_v37 = vld [vmem:[%s3457_s3 + $0x36] sm:$0x1]  ;;  %v885_v40 = vld [vmem:[%s3457_s3 + $0x7] sm:$0x1] }
 0x3cf   :  { %v651_v34 = vsel %vm650_vm5, %v649_v3, %v648_v12  ;;  %v731_v48 = vsel %vm656_vm7, %v730_v8, %v729_v33  ;;  %v778_v3 = vld [vmem:[%s3457_s3 + $0x44] sm:$0x1]  ;;  %v797_v7 = vsel %vm644_vm3, %v796_v46, %v795_v52  ;;  %v814_v8 = vld [vmem:[%s3457_s3 + $0x35] sm:$0x1]  ;;  %v850_v12 = vld [vmem:[%s3457_s3 + $0x26] sm:$0x1]  ;;  %v766_v26 = vsel %vm653_vm6, %v765_v59, %v764_v63 }
 0x3d0   :  { %v654_v49 = vsel %vm653_vm6, %v652_v27, %v651_v34  ;;  %v3165_v16 = vsel %vm659_vm8, %v732_v10, %v731_v48  ;;  %v3184_v27 = vld [vmem:[%s3457_s3 + $0x64] sm:$0x1]  ;;  %v800_v29 = vrot.slane %v778_v3, 4  ;;  %v905_v32 = vrot.slane %v886_v5, 7  ;;  %v3213_v46 = vld [vmem:[%s3457_s3 + $0x74] sm:$0x1] }
 0x3d1   :  { %2020 = vmatpush1.bf16.msra.mxu1 %v2019_v18  ;;  %v657_v6 = vsel %vm656_vm7, %v655_v38, %v654_v49  ;;  %v799_v34 = vsel %vm647_vm4, %v798_v4, %v797_v7  ;;  %v835_v35 = vrot.slane %v814_v8, 5  ;;  %v870_v39 = vrot.slane %v850_v12, 6  ;;  %v888_v38 = vld [vmem:[%s3457_s3 + $0x37] sm:$0x1]  ;;  %v922_v52 = vld [vmem:[%s3457_s3 + $0x8] sm:$0x1] }
 0x3d2   :  { %2022 = vmatprep.subr.bf16.mxu1 %v2021_v25  ;;  %v694_v25 = vsel %vm656_vm7, %v693_v57, %v692_v61  ;;  %v660_v33 = vsel %vm659_vm8, %v658_v56, %v657_v6  ;;  %v869_v43 = vsel %vm641_vm2, %v868_v13, %v848_v21  ;;  %v768_v45 = vsel %vm656_vm7, %v767_v2, %v766_v26  ;;  %v816_v55 = vld [vmem:[%s3457_s3 + $0x55] sm:$0x1]  ;;  %v852_v57 = vld [vmem:[%s3457_s3 + $0x46] sm:$0x1]  ;;  %v925_v3 = vld [vmem:[%s3457_s3 + $0x38] sm:$0x1] }
 0x3d3   :  { %v696_v17 = vsel %vm659_vm8, %v695_v58, %v694_v25  ;;  %v802_v48 = vrot.slane %v779_v19, 3  ;;  %v907_v49 = vrot.slane %v887_v31, 6  ;;  %v801_v54 = vsel %vm650_vm5, %v800_v29, %v799_v34  ;;  %v889_v6 = vld [vmem:[%s3457_s3 + $0x47] sm:$0x1]  ;;  %v961_v11 = vld [vmem:[%s3457_s3 + $0x29] sm:$0x1] }
 0x3d4   :  { %v837_v56 = vrot.slane %v815_v30, 4  ;;  %v872_v58 = vrot.slane %v851_v37, 5  ;;  %v906_v59 = vsel %vm641_vm2, %v905_v32, %v885_v40  ;;  %v804_v60 = vrot.slane %v3184_v27, 2  ;;  %v853_v20 = vld [vmem:[%s3457_s3 + $0x56] sm:$0x1] }
 0x3d5   :  { %v836_v63 = vsel %vm647_vm4, %v835_v35, %v834_v42  ;;  %v871_v2 = vsel %vm644_vm3, %v870_v39, %v869_v43  ;;  %v944_v4 = vrot.slane %v924_v36, 6  ;;  %v3241_v5 = vsel %vm659_vm8, %v769_v41, %v768_v45  ;;  %v959_v25 = vld [vmem:[%s3457_s3 + $0x9] sm:$0x1]  ;;  %v926_v30 = vld [vmem:[%s3457_s3 + $0x48] sm:$0x1] }
 0x3d6   :  { %v909_v7 = vrot.slane %v888_v38, 5  ;;  %v943_v8 = vsel %vm641_vm2, %v942_v44, %v922_v52  ;;  %v979_v12 = vrot.slane %v960_v53, 7  ;;  %v803_v13 = vsel %vm653_vm6, %v802_v48, %v801_v54  ;;  %v890_v34 = vld [vmem:[%s3457_s3 + $0x57] sm:$0x1]  ;;  %v962_v39 = vld [vmem:[%s3457_s3 + $0x39] sm:$0x1] }
 0x3d7   :  { %v839_v19 = vrot.slane %v816_v55, 3  ;;  %v874_v21 = vrot.slane %v852_v57, 4  ;;  %v908_v22 = vsel %vm644_vm3, %v907_v49, %v906_v59  ;;  %v806_v26 = vrot.slane %v3213_v46, 1  ;;  %v854_v43 = vld [vmem:[%s3457_s3 + $0x66] sm:$0x1] }
 0x3d8   :  { %v838_v27 = vsel %vm650_vm5, %v837_v56, %v836_v63  ;;  %v873_v29 = vsel %vm647_vm4, %v872_v58, %v871_v2  ;;  %v946_v31 = vrot.slane %v925_v3, 5  ;;  %v911_v35 = vrot.slane %v889_v6, 4  ;;  %v927_v48 = vld [vmem:[%s3457_s3 + $0x58] sm:$0x1]  ;;  %v963_v55 = vld [vmem:[%s3457_s3 + $0x49] sm:$0x1] }
 0x3d9   :  { %v945_v37 = vsel %vm644_vm3, %v944_v4, %v943_v8  ;;  %v981_v40 = vrot.slane %v961_v11, 6  ;;  %v841_v41 = vrot.slane %v817_v62, 2  ;;  %v876_v38 = vrot.slane %v853_v20, 3  ;;  %v855_v58 = vld [vmem:[%s3457_s3 + $0x76] sm:$0x1] }
 0x3da   :  { %v980_v36 = vsel %vm641_vm2, %v979_v12, %v959_v25  ;;  %v840_v45 = vsel %vm653_vm6, %v839_v19, %v838_v27  ;;  %v875_v46 = vsel %vm650_vm5, %v874_v21, %v873_v29  ;;  %v948_v49 = vrot.slane %v926_v30, 4  ;;  %v928_v4 = vld [vmem:[%s3457_s3 + $0x68] sm:$0x1]  ;;  %v892_v11 = vld [vmem:[%s3457_s3 + $0x77] sm:$0x1] }
 0x3db   :  { %v805_v53 = vsel %vm656_vm7, %v804_v60, %v803_v13  ;;  %v947_v54 = vsel %vm647_vm4, %v946_v31, %v945_v37  ;;  %v983_v56 = vrot.slane %v962_v39, 5  ;;  %v878_v59 = vrot.slane %v854_v43, 2  ;;  %v964_v19 = vld [vmem:[%s3457_s3 + $0x59] sm:$0x1]  ;;  %v929_v31 = vld [vmem:[%s3457_s3 + $0x78] sm:$0x1] }
 0x3dc   :  { %v982_v62 = vsel %vm644_vm3, %v981_v40, %v980_v36  ;;  %v842_v63 = vsel %vm656_vm7, %v841_v41, %v840_v45  ;;  %v877_v3 = vsel %vm653_vm6, %v876_v38, %v875_v46  ;;  %v950_v6 = vrot.slane %v927_v48, 3  ;;  %v965_v37 = vld [vmem:[%s3457_s3 + $0x69] sm:$0x1] }
 0x3dd   :  { %v949_v13 = vsel %vm650_vm5, %v948_v49, %v947_v54  ;;  %v985_v20 = vrot.slane %v963_v55, 4  ;;  %v807_v21 = vsel %vm659_vm8, %v806_v26, %v805_v53  ;;  %v879_v30 = vsel %vm656_vm7, %v878_v59, %v877_v3  ;;  %v1179_v59 = vld [vmem:[%s3462_s8 + $0x10] sm:$0xff] }
 0x3de   :  { %v951_v26 = vsel %vm653_vm6, %v950_v6, %v949_v13  ;;  %v987_v39 = vrot.slane %v964_v19, 3  ;;  %v954_v38 = vrot.slane %v929_v31, 1  ;;  %v989_v45 = vrot.slane %v965_v37, 2  ;;  %v1185_v6 = vld [vmem:[%s3462_s8 + $0x40] sm:$0xff]  ;;  %v1216_v31 = vld [vmem:[%s3462_s8 + $0x138] sm:$0xff] }
 0x3df   :  { %v1197_v19 = vld [vmem:[%s3462_s8 + $0xa0] sm:$0xff] }
 0x411   :  { %v3090_v18 = vpop.permute.xlu1 %629  ;;  %v710_v52 = vpop.permute.xlu0 %709 }
 0x412   :  { %v662_v44 = vmul.f32 %v660_v33, %v3090_v18  ;;  %v891_v18 = vld [vmem:[%s3457_s3 + $0x67] sm:$0x1]  ;;  %v913_v33 = vrot.slane %v890_v34, 3 }
 0x413   :  { %v915_v12 = vrot.slane %v891_v18, 2 }
 0x416   :  { %v3133_v51 = vpop.permute.xlu1 %672 }
 0x417   :  { %v698_v32 = vmul.f32 %v696_v17, %v3133_v51  ;;  %v910_v51 = vsel %vm647_vm4, %v909_v7, %v908_v22  ;;  %v818_v17 = vld [vmem:[%s3457_s3 + $0x75] sm:$0x1]  ;;  %v735_v7 = vmul.f32 %v3165_v16, %v710_v52  ;;  %v880_v22 = vrot.slane %v855_v58, 1 }
 0x418   :  { %v912_v60 = vsel %vm650_vm5, %v911_v35, %v910_v51  ;;  %v843_v2 = vrot.slane %v818_v17, 1  ;;  %v984_v16 = vsel %vm647_vm4, %v983_v56, %v982_v62  ;;  %v917_v35 = vrot.slane %v892_v11, 1  ;;  %v966_v17 = vld [vmem:[%s3457_s3 + $0x79] sm:$0x1]  ;;  %v1191_v11 = vld [vmem:[%s3462_s8 + $0x70] sm:$0xff] }
 0x419   :  { %v699_v57 = vadd.f32 %v698_v32, %v662_v44  ;;  %v914_v25 = vsel %vm653_vm6, %v913_v33, %v912_v60  ;;  %v952_v32 = vrot.slane %v928_v4, 2  ;;  %v881_v41 = vsel %vm659_vm8, %v880_v22, %v879_v30  ;;  %v1182_v60 = vld [vmem:[%s3462_s8 + $0x28] sm:$0xff]  ;;  %v1213_v30 = vld [vmem:[%s3462_s8 + $0x120] sm:$0xff] }
 0x41a   :  { %v844_v34 = vsel %vm659_vm8, %v843_v2, %v842_v63  ;;  %v991_v53 = vrot.slane %v966_v17, 1  ;;  %v2030_v3 = vpack.c.bf16 %v1182_v60, %v1179_v59  ;;  %v1206_v22 = vld [vmem:[%s3462_s8 + $0xe8] sm:$0xff] }
 0x41b   :  { %v3179_v10 = vpop.permute.xlu1 %746  ;;  %v736_v27 = vadd.f32 %v735_v7, %v699_v57  ;;  %v953_v44 = vsel %vm656_vm7, %v952_v32, %v951_v26  ;;  %v1188_v7 = vld [vmem:[%s3462_s8 + $0x58] sm:$0xff]  ;;  %v1215_v32 = vld [vmem:[%s3462_s8 + $0x130] sm:$0xff] }
 0x41c   :  { %v772_v29 = vmul.f32 %v3241_v5, %v3179_v10  ;;  %v916_v10 = vsel %vm656_vm7, %v915_v12, %v914_v25  ;;  %v986_v5 = vsel %vm650_vm5, %v985_v20, %v984_v16  ;;  %v955_v52 = vsel %vm659_vm8, %v954_v38, %v953_v44  ;;  %v1194_v12 = vld [vmem:[%s3462_s8 + $0x88] sm:$0xff]  ;;  %v1209_v16 = vld [vmem:[%s3462_s8 + $0x100] sm:$0xff] }
 0x41d   :  { %v918_v46 = vsel %vm659_vm8, %v917_v35, %v916_v10  ;;  %v2036_v13 = vpack.c.bf16 %v1194_v12, %v1191_v11  ;;  %v1218_v35 = vld [vmem:[%s3462_s8 + $0x148] sm:$0xff]  ;;  %v1223_v10 = vld [vmem:[%s3462_s8 + $0x170] sm:$0xff] }
 0x41e   :  { %v773_v51 = vadd.f32 %v772_v29, %v736_v27  ;;  %v1212_v27 = vld [vmem:[%s3462_s8 + $0x118] sm:$0xff]  ;;  %v2048_v37 = vpack.c.bf16 %v1218_v35, %v1215_v32 }
 0x41f   :  { %v2045_v29 = vpack.c.bf16 %v1212_v27, %v1209_v16 }
 0x420   :  { %v3230_v61 = vpop.permute.xlu1 %783 }
 0x421   :  { %v809_v40 = vmul.f32 %v807_v21, %v3230_v61  ;;  %v988_v61 = vsel %vm653_vm6, %v987_v39, %v986_v5  ;;  %v1203_v21 = vld [vmem:[%s3462_s8 + $0xd0] sm:$0xff] }
 0x422   :  { %v2042_v25 = vpack.c.bf16 %v1206_v22, %v1203_v21 }
 0x423   :  { %v810_v48 = vadd.f32 %v809_v40, %v773_v51  ;;  %v1220_v40 = vld [vmem:[%s3462_s8 + $0x158] sm:$0xff]  ;;  %v1221_v51 = vld [vmem:[%s3462_s8 + $0x160] sm:$0xff] }
 0x424   :  { %v2025_v5 = vpack.c.bf16 %v1223_v10, %v1220_v40 }
 0x425   :  { %v821_v42 = vpop.permute.xlu1 %820 }
 0x426   :  { %v846_v36 = vmul.f32 %v844_v34, %v821_v42  ;;  %v990_v42 = vsel %vm656_vm7, %v989_v45, %v988_v61  ;;  %v2023_v34 = vpack.c.bf16 %v1216_v31, %v1213_v30  ;;  %v1522_v45 = vld [vmem:[%s3461_s7] ss:$0 sm:$0xff] }
 0x427   :  { %v992_v57 = vsel %vm659_vm8, %v991_v53, %v990_v42 }
 0x428   :  { %v847_v18 = vadd.f32 %v846_v36, %v810_v48  ;;  %2024 = vmatpush1.bf16.msra.mxu1 %v2023_v34  ;;  %v1224_v36 = vld [vmem:[%s3462_s8 + $0x178] sm:$0xff] }
 0x429   :  { %2026 = vmatprep.subr.bf16.mxu1 %v2025_v5  ;;  %v2051_v44 = vpack.c.bf16 %v1224_v36, %v1221_v51 }
 0x42a   :  { %v858_v8 = vpop.permute.xlu1 %857 }
 0x42b   :  { %v883_v49 = vmul.f32 %v881_v41, %v858_v8  ;;  %v2033_v8 = vpack.c.bf16 %v1188_v7, %v1185_v6  ;;  %v1219_v41 = vld [vmem:[%s3462_s8 + $0x150] sm:$0xff] }
 0x42d   :  { %v884_v55 = vadd.f32 %v883_v49, %v847_v18 }
 0x42f   :  { %v895_v43 = vpop.permute.xlu1 %894 }
 0x430   :  { %v920_v33 = vmul.f32 %v918_v46, %v895_v43  ;;  %v1222_v43 = vld [vmem:[%s3462_s8 + $0x168] sm:$0xff] }
 0x431   :  { %v2027_v38 = vpack.c.bf16 %v1222_v43, %v1219_v41 }
 0x432   :  { %v921_v58 = vadd.f32 %v920_v33, %v884_v55 }
 0x433   :  { %2028 = vmatpush1.bf16.msra.mxu1 %v2027_v38 }
 0x434   :  { %v932_v54 = vpop.permute.xlu1 %931 }
 0x435   :  { %v957_v56 = vmul.f32 %v955_v52, %v932_v54 }
 0x437   :  { %v958_v63 = vadd.f32 %v957_v56, %v921_v58 }
 0x439   :  { %v969_v62 = vpop.permute.xlu1 %968 }
 0x43a   :  { %v994_v2 = vmul.f32 %v992_v57, %v969_v62 }
 0x43c   :  { %v995_v4 = vadd.f32 %v994_v2, %v958_v63 }
 0x43e   :  { %1773 = vmatmul.mubr.f32.vlgmr.msra.gmra.mrb[4].mxu0 %v995_v4 }
 0x43f   :  { %2031 = vmatpush3.bf16.msra.mxu0 %v2030_v3  ;;  %1842 = vmatprep.mubr.msk.f32.mxu0 %vm2440_vm0, %v2441_v1  ;;  %v1200_v1 = vld [vmem:[%s3462_s8 + $0xb8] sm:$0xff] }
 0x440   :  { %2032 = vmatprep.subr.bf16.mxu0 %v2439_v0  ;;  %v2039_v20 = vpack.c.bf16 %v1200_v1, %v1197_v19 }
 0x443   :  { %2034 = vmatpush3.bf16.msra.mxu0 %v2033_v8 }
 0x444   :  { %2035 = vmatprep.subr.bf16.mxu0 %v2439_v0 }
 0x447   :  { %2037 = vmatpush3.bf16.msra.mxu0 %v2036_v13 }
 0x448   :  { %2038 = vmatprep.subr.bf16.mxu0 %v2439_v0 }
 0x44b   :  { %2040 = vmatpush3.bf16.msra.mxu0 %v2039_v20 }
 0x44c   :  { %2041 = vmatprep.subr.bf16.mxu0 %v2439_v0 }
 0x44f   :  { %2043 = vmatpush3.bf16.msra.mxu0 %v2042_v25 }
 0x450   :  { %2044 = vmatprep.subr.bf16.mxu0 %v2439_v0 }
 0x453   :  { %2046 = vmatpush3.bf16.msra.mxu0 %v2045_v29 }
 0x454   :  { %2047 = vmatprep.subr.bf16.mxu0 %v2439_v0 }
 0x457   :  { %2049 = vmatpush3.bf16.msra.mxu0 %v2048_v37 }
 0x458   :  { %2050 = vmatprep.subr.bf16.mxu0 %v2439_v0 }
 0x45b   :  { %2052 = vmatpush3.bf16.msra.mxu0 %v2051_v44 }
 0x46e   :  { %v1164_v26 = vpop.f32.mrb[4].mxu1 }
 0x46f   :  { %v1809_v39 = vpop.f32.mrb[5].mxu1 }
 0x511   :  { %v1094_v17 = vpop.f32.mrb[4].mxu0 }
 0x512   :  { %v1165_v46 = vadd.f32 %v1164_v26, %v1094_v17  ;;  %v1774_v0 = vpop.f32.mrb[5].mxu0 }
 0x514   :  { %v1175_v61 = vadd.f32 %v1522_v45, %v1165_v46 }
 0x516   :  { %v1176_v48 = vmax.f32 %v1175_v61, 0.0 }
 0x518   :  { %1307 = vmatmul.mubr.f32.vlgmr.msra.gmra.mrb[0].mxu1 %v1176_v48  ;;  %1843 = vmatmul.mubr.f32.vlgmr.msra.gmra.mrb[6].mxu0 %v1176_v48 }
 0x519   :  { %2373 = shalt.err (!%p2370_p9)
}
 0x51a   :  { %s2374_s7 = scalar_lea.hbm %s3467_s13, 128 }
 0x51b   :  { %p2375_p10 = scmp.ne.s32.totalorder %s3467_s13, %s2374_s7  ;;  %p2378_p11 = scmp.lt.u32.totalorder %s2374_s7, %s3467_s13 }
 0x51d   :  { %p2380_p12 = pnand %p2378_p11, %p2375_p10 }
 0x51f   :  { %2383 = shalt.err (!%p2380_p12)
}
 0x520   :  { %1424 = dma.vmem_to_hbm [thread:$0]  %s1422_s29, 128, %s3467_s13, [#allocation13]   ;;  %v1225_v49 = vld [vmem:[%s3464_s10] sm:$0x7] }
 0x521   :  { %v1230_v52 = vrot.slane %v1225_v49, %v340_v14  ;;  %v1234_v53 = vrot.slane %v1225_v49, %v344_v15  ;;  %v1238_v15 = vrot.slane %v1225_v49, %v348_v47  ;;  %s2461_s10 = smov [#allocation11]  }
 0x522   :  { %s1411_s13 = sshll.u32 %s2461_s10, 4  ;;  %s1412_s13 = int_to_ptr.vmem [resolvable:$true] %s1411_s13 }
 0x523   :  { %v2053_v18 = vadd.f32 %v1230_v52, %v2714_v23  ;;  %v2055_v42 = vadd.f32 %v1234_v53, %v2719_v24  ;;  %s2384_s17 = scalar_lea.vmem %s1412_s13, 128  ;;  %p2389_p0 = scmp.lt.s32.totalorder %s1412_s13, %s1412_s13 }
 0x524   :  { %p2385_p13 = scmp.ne.s32.totalorder %s1412_s13, %s2384_s17  ;;  %p2390_p1 = scmp.lt.s32.totalorder %s2384_s17, %s2384_s17 }
 0x526   :  { %p2391_p2 = por %p2390_p1, %p2389_p0 }
 0x528   :  { %p2392_p3 = pnand %p2391_p2, %p2385_p13 }
 0x5eb   :  { %v1308_v33 = vpop.f32.mrb[0].mxu1  ;;  %v1379_v54 = vpop.f32.mrb[6].mxu0 }
 0x5ec   :  { %v2054_v55 = vadd.f32 %v2053_v18, %v1308_v33  ;;  %v1310_v56 = vpop.f32.mrb[1].mxu1  ;;  %v1844_v57 = vpop.f32.mrb[7].mxu0  ;;  %v1380_v3 = vadd.f32 %v1379_v54, %v1238_v15 }
 0x5ed   :  { %v2056_v59 = vadd.f32 %v2055_v42, %v1310_v56 }
 0x5ee   :  { %v1523_v58 = vmul.f32 -1.442695, %v2054_v55 }
 0x5ef   :  { %v1524_v60 = vmul.f32 -1.442695, %v2056_v59 }
 0x5f0   :  { %2104 = vpow2.f32 %v1523_v58 }
 0x5f1   :  { %2106 = vpow2.f32 %v1524_v60 }
 0x5fa   :  { %v2105_v62 = vpop.eup %2104 }
 0x5fb   :  { %v1387_v63 = vadd.f32 1.0, %v2105_v62  ;;  %v2107_v14 = vpop.eup %2106 }
 0x5fc   :  { %v1394_v23 = vadd.f32 1.0, %v2107_v14 }
 0x5fd   :  { %2108 = vrcp.f32 %v1387_v63 }
 0x5fe   :  { %2110 = vrcp.f32 %v1394_v23 }
 0x607   :  { %v2109_v2 = vpop.eup %2108 }
 0x608   :  { %v1397_v24 = vmul.f32 %v2109_v2, %v2816_v50  ;;  %v2111_v6 = vpop.eup %2110 }
 0x609   :  { %v1400_v7 = vsub.f32 1.0, %v2111_v6  ;;  %v1402_v12 = vmul.f32 %v2111_v6, %v2621_v28 }
 0x60a   :  { %v1398_v4 = vadd.f32 %v1397_v24, %v1380_v3 }
 0x60c   :  { %2112 = vtanh.f32 %v1398_v4 }
 0x616   :  { %v2113_v8 = vpop.eup %2112 }
 0x617   :  { %v1401_v11 = vmul.f32 %v2113_v8, %v1400_v7 }
 0x619   :  { %v1403_v13 = vadd.f32 %v1402_v12, %v1401_v11 }
 0x61b   :  { %1404 = vst [vmem:[#allocation11] sm:$0xff] %v1403_v13 }
 0x61c   :  { %2395 = shalt.err (!%p2392_p3)
}
 0x61d   :  { %s2396_s23 = scalar_lea.hbm %s3466_s12, 128 }
 0x61e   :  { %p2397_p4 = scmp.ne.s32.totalorder %s3466_s12, %s2396_s23  ;;  %p2400_p5 = scmp.lt.u32.totalorder %s2396_s23, %s3466_s12 }
 0x620   :  { %p2402_p6 = pnand %p2400_p5, %p2397_p4 }
 0x622   :  { %2405 = shalt.err (!%p2402_p6)
}
 0x623   :  { %1414 = dma.vmem_to_hbm [thread:$0]  %s1412_s13, 128, %s3466_s12, [#allocation8]  }
 0x624   :  { %2428 = dma.done.wait [#allocation8], 128  }
 0x625   :  { %2429 = vsyncadd [#allocation8], 4294967168 }
 0x626   :  { %2430 = dma.done.wait [#allocation13], 128  }
 0x627   :  { %2431 = vsyncadd [#allocation13], 4294967168 }
 0x628   :  { %1431 = vsyncpa [#allocation7], 1 }
 0x629   :  { %1432 = vsyncpa [#allocation10], 1 }
 0x62a   :  { %1433 = vsyncpa [#allocation8], 1 }
 0x62b   :  { %1434 = vsyncpa [#allocation13], 1 }
 0x62c   :  { %1435 = vsyncmov [#allocation3] }
 0x62f   :  { %s1436_s25 = vpop.sfrf %1435 }
 0x630   :  { %p1525_p7 = scmp.ne.s32.totalorder %s1436_s25, 0 }
 0x632   :  { %1440 = shalt.err (%p1525_p7)  }
 0x633   :  { %1442 = vsyncmov [#allocation3 + $0x1] }
 0x636   :  { %s1443_s15 = vpop.sfrf %1442 }
 0x637   :  { %p1526_p8 = scmp.ne.s32.totalorder %s1443_s15, 0 }
 0x639   :  { %1447 = shalt.err (%p1526_p8)  }
 0x63a   :  { %1449 = vsyncmov [#allocation3 + $0x2] }
 0x63d   :  { %s1450_s16 = vpop.sfrf %1449 }
 0x63e   :  { %p1527_p9 = scmp.ne.s32.totalorder %s1450_s16, 0 }
 0x640   :  { %1454 = shalt.err (%p1527_p9)  }
 0x641   :  { %1456 = vsyncmov [#allocation3 + $0x3] }
 0x644   :  { %s1457_s12 = vpop.sfrf %1456 }
 0x645   :  { %p1528_p10 = scmp.ne.s32.totalorder %s1457_s12, 0 }
 0x647   :  { %1461 = shalt.err (%p1528_p10)  }
 0x648   :  { %1463 = vsyncmov [#allocation3 + $0x4] }
 0x64b   :  { %s1464_s22 = vpop.sfrf %1463 }
 0x64c   :  { %p1529_p11 = scmp.ne.s32.totalorder %s1464_s22, 0 }
 0x64e   :  { %1468 = shalt.err (%p1529_p11)  }
 0x64f   :  { %1470 = vsyncmov [#allocation3 + $0x5] }
 0x652   :  { %s1471_s28 = vpop.sfrf %1470 }
 0x653   :  { %p1530_p12 = scmp.ne.s32.totalorder %s1471_s28, 0 }
 0x655   :  { %1475 = shalt.err (%p1530_p12)  }
 0x656   :  { %1477 = vsyncmov [#allocation3 + $0x6] }
 0x659   :  { %s1478_s29 = vpop.sfrf %1477 }
 0x65a   :  { %p1531_p13 = scmp.ne.s32.totalorder %s1478_s29, 0 }
 0x65c   :  { %1482 = shalt.err (%p1531_p13)  }
 0x65d   :  { %1484 = vsyncmov [#allocation3 + $0x7] }
 0x660   :  { %s1485_s11 = vpop.sfrf %1484 }
 0x661   :  { %p1532_p0 = scmp.ne.s32.totalorder %s1485_s11, 0 }
 0x663   :  { %1489 = shalt.err (%p1532_p0)  }

</bundles_post_ra>
